<compile_context>
chip_gen: v7x
topology: tpu7x:2x2x1
jax: 0.10.0
libtpu: 0.0.40
codegen_flags: <defaults>
</compile_context>

<pallas_src>
import jax
import jax.numpy as jnp
from jax.experimental import pallas as pl
from jax.experimental.pallas import tpu as pltpu

LANE = 128  # TPU lane width; channel dimension is padded to this


# ------------------------------ fused kernel --------------------------------

def _make_fused_kernel(layer_flags, *, k, dilation, seq_len):
    """Build the fused multi-layer residual-block kernel.

    layer_flags: tuple of bools -- use_scaling (1x1-conv residual) per layer.
    seq_len:     (padded) per-sequence length; each block holds rows//seq_len
                 sequences flattened along the row (sublane) axis.
    """
    # Non-zero causal shifts actually used; taps with d >= seq_len contribute
    # nothing (fully masked) and are skipped entirely.
    shift_list = [dilation * t for t in range(1, k) if dilation * t < seq_len]

    def kernel(x_ref, *rest):
        o_ref = rest[-1]
        w_refs = rest[:-1]
        rows, cpad = x_ref.shape
        nseq = rows // seq_len

        # Hoisted causal masks: one boolean block per distinct shift, shared
        # by both convs of every layer.  Built from a 3-D iota over
        # (nseq, seq_len, cpad) -> no int32 modulo on the VPU.
        masks = {}
        if shift_list:
            t_idx = jax.lax.broadcasted_iota(
                jnp.int32, (nseq, seq_len, cpad), 1).reshape(rows, cpad)
            for d in shift_list:
                masks[d] = t_idx >= d

        def causal_conv(h, hb, w_ref, b_ref):
            # h:  f32 activations (rows, cpad); hb: same, pre-cast to bf16.
            # Tap with d == 0 needs no shift/mask and seeds the accumulator.
            acc = jnp.dot(hb, w_ref[k - 1],
                          preferred_element_type=jnp.float32)
            for j in range(k - 2, -1, -1):
                d = dilation * (k - 1 - j)             # left shift of tap j
                if d >= seq_len:
                    continue
                # roll on f32 (XLU), mask (VPU select), cast to bf16 for MXU.
                shifted = jnp.where(masks[d], pltpu.roll(h, d, 0), 0.0)
                acc = acc + jnp.dot(shifted.astype(jnp.bfloat16), w_ref[j],
                                    preferred_element_type=jnp.float32)
            return acc + b_ref[...]

        h = x_ref[...]                                  # (rows, 128) f32
        idx = 0
        for use_scaling in layer_flags:
            w0, b0, w1, b1 = (w_refs[idx], w_refs[idx + 1],
                              w_refs[idx + 2], w_refs[idx + 3])
            idx += 4
            hb = h.astype(jnp.bfloat16)                 # reused by conv0 + scaling
            a = jnp.maximum(causal_conv(h, hb, w0, b0), 0.0)    # ReLU (dropout=id)
            a = jnp.maximum(causal_conv(a, a.astype(jnp.bfloat16), w1, b1),
                            0.0)                                 # ReLU (dropout=id)
            if use_scaling:
                ws, bs = w_refs[idx], w_refs[idx + 1]
                idx += 2
                res = jnp.dot(hb, ws[...],
                              preferred_element_type=jnp.float32) + bs[...]
            else:
                res = h
            h = res + a

        o_ref[...] = h.astype(o_ref.dtype)

    return kernel


# ------------------------------ host wrapper --------------------------------

def _const_index_map(ndim):
    return lambda i: (0,) * ndim


def _pick_batch_tile(batch, seq_len):
    """Sequences per grid step.

    Target >= 512 matmul rows per step so the MXU M-dimension is well filled
    and the ~0.35us/step grid overhead is amortized.  Only keep >= 2 grid
    steps (useful for v7x's two TensorCores) when each step still gets >= 256
    rows; otherwise collapse to a single step."""
    target_rows, min_split_rows = 512, 256
    seq_len = max(seq_len, 1)
    tb = max(1, min(batch, target_rows // seq_len))
    while batch % tb:
        tb -= 1
    if tb < batch and tb * seq_len < min_split_rows:
        tb = batch                      # tiny steps are pure overhead
    return tb


def time_series_cnn(x_ncl, layers, *, k=3, dilation=1):
    """Forward pass of the fused TimeSeriesCNN.

    x_ncl:  (N, C, L) float32, PyTorch Conv1d layout.
    layers: list of (params, use_scaling); params = (w0, b0, w1, b1, ws, bs)
            with w* as (k, Cin, Cout) / (Cin, Cout) and b* as (Cout,).
            ws/bs are None when use_scaling is False.
    """
    B, c_in, L = x_ncl.shape
    Lp = -(-L // 8) * 8                        # sublane-aligned sequence length
    Cp = LANE                                  # lane-dense channel width
    c_out_final = layers[-1][0][2].shape[-1]   # Cout of last layer's conv1

    # (B, C, L) -> (B, L, C) -> zero-pad time & channels -> flatten rows.
    x = jnp.transpose(x_ncl, (0, 2, 1)).astype(jnp.float32)
    x = jnp.pad(x, ((0, 0), (0, Lp - L), (0, Cp - c_in)))
    x_flat = x.reshape(B * Lp, Cp)

    # Zero-pad all weights to a uniform (..., Cp, Cp) width; conv / 1x1
    # weights are pre-cast to bf16 (MXU-native on every generation), biases
    # stay f32 (added to f32 accumulators).  Padded channels stay exactly
    # zero through every conv/ReLU/residual, so results match.
    weight_arrays = []
    layer_flags = []
    for (w0, b0, w1, b1, ws, bs), use_scaling in layers:
        ci, co = w0.shape[1], w0.shape[2]
        weight_arrays += [
            jnp.pad(w0, ((0, 0), (0, Cp - ci), (0, Cp - co))).astype(jnp.bfloat16),
            jnp.pad(b0.reshape(1, -1), ((0, 0), (0, Cp - co))),
            jnp.pad(w1, ((0, 0), (0, Cp - co), (0, Cp - co))).astype(jnp.bfloat16),
            jnp.pad(b1.reshape(1, -1), ((0, 0), (0, Cp - co))),
        ]
        if use_scaling:                         # only ship ws/bs when used
            weight_arrays += [
                jnp.pad(ws, ((0, Cp - ci), (0, Cp - co))).astype(jnp.bfloat16),
                jnp.pad(bs.reshape(1, -1), ((0, 0), (0, Cp - co))),
            ]
        layer_flags.append(bool(use_scaling))

    tb = _pick_batch_tile(B, Lp)
    rows = tb * Lp
    grid = (B // tb,)

    kernel = _make_fused_kernel(tuple(layer_flags), k=k, dilation=dilation,
                                seq_len=Lp)

    in_specs = [pl.BlockSpec((rows, Cp), lambda i: (i, 0))]
    for w in weight_arrays:
        in_specs.append(pl.BlockSpec(w.shape, _const_index_map(w.ndim)))
    out_specs = pl.BlockSpec((rows, Cp), lambda i: (i, 0))

    # Advisory cost so XLA schedules the surrounding reshapes/transposes well.
    n_rows = B * Lp
    flops = 0
    for use_scaling in layer_flags:
        flops += 2 * n_rows * Cp * Cp * (2 * k + (1 if use_scaling else 0))
    weight_bytes = sum(int(w.size) * w.dtype.itemsize for w in weight_arrays)
    bytes_accessed = 2 * n_rows * Cp * 4 + weight_bytes
    cost = pl.CostEstimate(flops=int(flops), transcendentals=0,
                           bytes_accessed=int(bytes_accessed))

    # Explicit scoped-VMEM budget: in/out activation blocks (double-buffered),
    # weights (double-buffered by default), plus headroom for in-kernel
    # temporaries.  Keeps larger tiles / deeper stacks from tripping the
    # conservative default limits (16 MiB v5e, 32 MiB v7x).
    act_bytes = rows * Cp * 4
    vmem_need = 2 * 2 * act_bytes + 2 * weight_bytes + 8 * act_bytes
    vmem_limit = int(min(max(vmem_need, 32 << 20), 48 << 20))

    out_flat = pl.pallas_call(
        kernel,
        out_shape=jax.ShapeDtypeStruct((B * Lp, Cp), jnp.float32),
        grid_spec=pltpu.PrefetchScalarGridSpec(
            num_scalar_prefetch=0,
            grid=grid,
            in_specs=in_specs,
            out_specs=out_specs,
        ),
        compiler_params=pltpu.CompilerParams(
            dimension_semantics=("parallel",),
            vmem_limit_bytes=vmem_limit),
        cost_estimate=cost,
    )(x_flat, *weight_arrays)

    out = out_flat.reshape(B, Lp, Cp)[:, :L, :c_out_final]
    return jnp.transpose(out, (0, 2, 1))       # back to (N, Cout, L)


# ------------------------- parameter construction ---------------------------

def _weight_norm_effective(v, g):
    """PyTorch weight_norm (dim=0): w = g * v / ||v|| over dims (1, 2)."""
    norm = jnp.sqrt(jnp.sum(v * v, axis=(1, 2), keepdims=True))
    return v * (g[:, None, None] / norm)


def _make_block_params(key, in_ch, out_ch, k):
    ks = jax.random.split(key, 9)
    scale = 0.3
    # conv0
    v0 = jax.random.uniform(ks[0], (out_ch, in_ch, k), jnp.float32, -scale, scale)
    g0 = jax.random.uniform(ks[1], (out_ch,), jnp.float32, 0.5, 1.5)
    b0 = jax.random.uniform(ks[2], (out_ch,), jnp.float32, -scale, scale)
    w0 = jnp.transpose(_weight_norm_effective(v0, g0), (2, 1, 0))   # (k, Cin, Cout)
    # conv1
    v1 = jax.random.uniform(ks[3], (out_ch, out_ch, k), jnp.float32, -scale, scale)
    g1 = jax.random.uniform(ks[4], (out_ch,), jnp.float32, 0.5, 1.5)
    b1 = jax.random.uniform(ks[5], (out_ch,), jnp.float32, -scale, scale)
    w1 = jnp.transpose(_weight_norm_effective(v1, g1), (2, 1, 0))   # (k, Cout, Cout)
    # channel scaling (1x1 conv) only when shapes differ (matches PyTorch)
    use_scaling = in_ch != out_ch
    if use_scaling:
        vs = jax.random.uniform(ks[6], (out_ch, in_ch, 1), jnp.float32, -scale, scale)
        gs = jax.random.uniform(ks[7], (out_ch,), jnp.float32, 0.5, 1.5)
        bs = jax.random.uniform(ks[8], (out_ch,), jnp.float32, -scale, scale)
        ws = jnp.transpose(_weight_norm_effective(vs, gs)[:, :, 0], (1, 0))  # (Cin, Cout)
    else:
        ws = bs = None
    return (w0, b0, w1, b1, ws, bs), use_scaling


# ------------------------------ pure-JAX ref ---------------------------------

def _ref_block(x_blc, params, use_scaling, k, dilation, mdt):
    """Reference block.  mdt = dtype of matmul operands (f32 for the exact
    PyTorch-semantics reference, bf16 to mirror the kernel's MXU inputs)."""
    w0, b0, w1, b1, ws, bs = params
    L = x_blc.shape[1]

    def conv(h, w, b):
        wb = w.astype(mdt)
        acc = jnp.einsum("blc,cd->bld", h.astype(mdt), wb[k - 1],
                         preferred_element_type=jnp.float32)
        for j in range(k - 2, -1, -1):
            d = dilation * (k - 1 - j)
            if d >= L:                     # fully-masked tap (degenerate case)
                continue
            hs = jnp.concatenate(
                [jnp.zeros((h.shape[0], d, h.shape[2]), h.dtype),
                 h[:, :L - d]], axis=1)
            acc = acc + jnp.einsum("blc,cd->bld", hs.astype(mdt), wb[j],
                                   preferred_element_type=jnp.float32)
        return acc + b.reshape(1, 1, -1)

    h = jnp.maximum(conv(x_blc, w0, b0), 0.0)
    h = jnp.maximum(conv(h, w1, b1), 0.0)
    if use_scaling:
        res = jnp.einsum("blc,cd->bld", x_blc.astype(mdt), ws.astype(mdt),
                         preferred_element_type=jnp.float32) + bs.reshape(1, 1, -1)
    else:
        res = x_blc
    return res + h


def time_series_cnn_ref(x_ncl, layers, *, k=3, dilation=1,
                        matmul_dtype=jnp.float32):
    x = jnp.transpose(x_ncl, (0, 2, 1)).astype(jnp.float32)
    for params, use_scaling in layers:
        x = _ref_block(x, params, use_scaling, k, dilation, matmul_dtype)
    return jnp.transpose(x, (0, 2, 1))


# ---------------------------------- main -------------------------------------

if __name__ == "__main__":
    # TimeSeriesCNN(n_layers=2, input_size=4, hidden_size=32, output_size=8),
    # kernel_size=3, dilation=1, pad=2 (as the PyTorch constructor implies).
    n_layers, input_size, hidden_size, output_size = 2, 4, 32, 8
    B, L = 2, 16
    k_size, dilation = 3, 1

    key = jax.random.PRNGKey(0)
    key, xkey = jax.random.split(key)
    x = jax.random.normal(xkey, (B, input_size, L), jnp.float32)   # (N, C, L)

    layers = []
    for i in range(n_layers):
        in_ch = hidden_size if i != 0 else input_size
        out_ch = hidden_size if i != n_layers - 1 else output_size
        key, bkey = jax.random.split(key)
        layers.append(_make_block_params(bkey, in_ch, out_ch, k_size))

    out = time_series_cnn(x, layers, k=k_size, dilation=dilation)
    out = jax.block_until_ready(out)
    assert out.shape == (B, output_size, L), out.shape

    # Tight check against a reference that mirrors the kernel's bf16 MXU
    # inputs / f32 accumulation (validates the kernel logic exactly)...
    ref_bf16 = time_series_cnn_ref(x, layers, k=k_size, dilation=dilation,
                                   matmul_dtype=jnp.bfloat16)
    assert jnp.allclose(out, ref_bf16, atol=1e-3, rtol=1e-3), \
        "mismatch vs bf16-matmul reference"

    # ...and a loose check against the full-f32 PyTorch-semantics reference
    # (bounds the bf16 rounding introduced for MXU-rate matmuls).
    ref_f32 = time_series_cnn_ref(x, layers, k=k_size, dilation=dilation,
                                  matmul_dtype=jnp.float32)
    assert jnp.allclose(out, ref_f32, atol=1e-1, rtol=1e-1), \
        "mismatch vs f32 reference"

    print("KERNEL_OK")
</pallas_src>

<mosaic_0001>
module attributes {stable_mosaic.version = 11 : i64} {
  func.func @kernel(%arg0: i32, %arg1: memref<32x128xf32, #tpu.memory_space<vmem>>, %arg2: memref<3x128x128xbf16, #tpu.memory_space<vmem>>, %arg3: memref<1x128xf32, #tpu.memory_space<vmem>>, %arg4: memref<3x128x128xbf16, #tpu.memory_space<vmem>>, %arg5: memref<1x128xf32, #tpu.memory_space<vmem>>, %arg6: memref<128x128xbf16, #tpu.memory_space<vmem>>, %arg7: memref<1x128xf32, #tpu.memory_space<vmem>>, %arg8: memref<3x128x128xbf16, #tpu.memory_space<vmem>>, %arg9: memref<1x128xf32, #tpu.memory_space<vmem>>, %arg10: memref<3x128x128xbf16, #tpu.memory_space<vmem>>, %arg11: memref<1x128xf32, #tpu.memory_space<vmem>>, %arg12: memref<128x128xbf16, #tpu.memory_space<vmem>>, %arg13: memref<1x128xf32, #tpu.memory_space<vmem>>, %arg14: memref<32x128xf32, #tpu.memory_space<vmem>>) attributes {dimension_semantics = [#tpu.dimension_semantics<parallel>], iteration_bounds = array<i64: 1>, scalar_prefetch = 0 : i64, scratch_operands = 0 : i64, tpu.core_type = #tpu.core_type<tc>, window_params = [{transform_indices = @transform_0, window_bounds = array<i64: 32, 128>}, {pipeline_mode = #tpu.pipeline_mode<synchronous>, transform_indices = @transform_1, window_bounds = array<i64: 3, 128, 128>}, {pipeline_mode = #tpu.pipeline_mode<synchronous>, transform_indices = @transform_2, window_bounds = array<i64: 1, 128>}, {pipeline_mode = #tpu.pipeline_mode<synchronous>, transform_indices = @transform_3, window_bounds = array<i64: 3, 128, 128>}, {pipeline_mode = #tpu.pipeline_mode<synchronous>, transform_indices = @transform_4, window_bounds = array<i64: 1, 128>}, {pipeline_mode = #tpu.pipeline_mode<synchronous>, transform_indices = @transform_5, window_bounds = array<i64: 128, 128>}, {pipeline_mode = #tpu.pipeline_mode<synchronous>, transform_indices = @transform_6, window_bounds = array<i64: 1, 128>}, {pipeline_mode = #tpu.pipeline_mode<synchronous>, transform_indices = @transform_7, window_bounds = array<i64: 3, 128, 128>}, {pipeline_mode = #tpu.pipeline_mode<synchronous>, transform_indices = @transform_8, window_bounds = array<i64: 1, 128>}, {pipeline_mode = #tpu.pipeline_mode<synchronous>, transform_indices = @transform_9, window_bounds = array<i64: 3, 128, 128>}, {pipeline_mode = #tpu.pipeline_mode<synchronous>, transform_indices = @transform_10, window_bounds = array<i64: 1, 128>}, {pipeline_mode = #tpu.pipeline_mode<synchronous>, transform_indices = @transform_11, window_bounds = array<i64: 128, 128>}, {pipeline_mode = #tpu.pipeline_mode<synchronous>, transform_indices = @transform_12, window_bounds = array<i64: 1, 128>}, {transform_indices = @transform_13, window_bounds = array<i64: 32, 128>}]} {
    %0 = tpu.iota {dimensions = array<i32: 1>} : vector<2x16x128xi32>
    %1 = vector.shape_cast %0 : vector<2x16x128xi32> to vector<32x128xi32>
    %c1_i32 = arith.constant 1 : i32
    %2 = vector.broadcast %c1_i32 : i32 to vector<32x128xi32>
    %3 = arith.cmpi sge, %1, %2 : vector<32x128xi32>
    %c2_i32 = arith.constant 2 : i32
    %4 = vector.broadcast %c2_i32 : i32 to vector<32x128xi32>
    %5 = arith.cmpi sge, %1, %4 : vector<32x128xi32>
    %c0 = arith.constant 0 : index
    %c0_0 = arith.constant 0 : index
    %6 = vector.load %arg1[%c0, %c0_0] : memref<32x128xf32, #tpu.memory_space<vmem>>, vector<32x128xf32>
    %7 = arith.truncf %6 : vector<32x128xf32> to vector<32x128xbf16>
    %c2 = arith.constant 2 : index
    %c0_1 = arith.constant 0 : index
    %c0_2 = arith.constant 0 : index
    %8 = vector.load %arg2[%c2, %c0_1, %c0_2] : memref<3x128x128xbf16, #tpu.memory_space<vmem>>, vector<1x128x128xbf16>
    %9 = vector.shape_cast %8 : vector<1x128x128xbf16> to vector<128x128xbf16>
    %cst = arith.constant dense<0.000000e+00> : vector<32x128xf32>
    %10 = tpu.matmul %7, %9, %cst {dimension_numbers = #tpu.dot_dimension_numbers<[1], [0], [0], [1], [0, 0, 1, 1], [], []>} : vector<32x128xbf16>, vector<128x128xbf16>, vector<32x128xf32> -> vector<32x128xf32>
    %c1_i32_3 = arith.constant 1 : i32
    %11 = tpu.dynamic_rotate %6 by %c1_i32_3 dim 0 : vector<32x128xf32>, i32 -> vector<32x128xf32>
    %cst_4 = arith.constant 0.000000e+00 : f32
    %12 = vector.broadcast %cst_4 : f32 to vector<32x128xf32>
    %13 = arith.select %3, %11, %12 : vector<32x128xi1>, vector<32x128xf32>
    %14 = arith.truncf %13 : vector<32x128xf32> to vector<32x128xbf16>
    %c1 = arith.constant 1 : index
    %c0_5 = arith.constant 0 : index
    %c0_6 = arith.constant 0 : index
    %15 = vector.load %arg2[%c1, %c0_5, %c0_6] : memref<3x128x128xbf16, #tpu.memory_space<vmem>>, vector<1x128x128xbf16>
    %16 = vector.shape_cast %15 : vector<1x128x128xbf16> to vector<128x128xbf16>
    %cst_7 = arith.constant dense<0.000000e+00> : vector<32x128xf32>
    %17 = tpu.matmul %14, %16, %cst_7 {dimension_numbers = #tpu.dot_dimension_numbers<[1], [0], [0], [1], [0, 0, 1, 1], [], []>} : vector<32x128xbf16>, vector<128x128xbf16>, vector<32x128xf32> -> vector<32x128xf32>
    %18 = arith.addf %10, %17 : vector<32x128xf32>
    %c2_i32_8 = arith.constant 2 : i32
    %19 = tpu.dynamic_rotate %6 by %c2_i32_8 dim 0 : vector<32x128xf32>, i32 -> vector<32x128xf32>
    %cst_9 = arith.constant 0.000000e+00 : f32
    %20 = vector.broadcast %cst_9 : f32 to vector<32x128xf32>
    %21 = arith.select %5, %19, %20 : vector<32x128xi1>, vector<32x128xf32>
    %22 = arith.truncf %21 : vector<32x128xf32> to vector<32x128xbf16>
    %c0_10 = arith.constant 0 : index
    %c0_11 = arith.constant 0 : index
    %c0_12 = arith.constant 0 : index
    %23 = vector.load %arg2[%c0_10, %c0_11, %c0_12] : memref<3x128x128xbf16, #tpu.memory_space<vmem>>, vector<1x128x128xbf16>
    %24 = vector.shape_cast %23 : vector<1x128x128xbf16> to vector<128x128xbf16>
    %cst_13 = arith.constant dense<0.000000e+00> : vector<32x128xf32>
    %25 = tpu.matmul %22, %24, %cst_13 {dimension_numbers = #tpu.dot_dimension_numbers<[1], [0], [0], [1], [0, 0, 1, 1], [], []>} : vector<32x128xbf16>, vector<128x128xbf16>, vector<32x128xf32> -> vector<32x128xf32>
    %26 = arith.addf %18, %25 : vector<32x128xf32>
    %c0_14 = arith.constant 0 : index
    %c0_15 = arith.constant 0 : index
    %27 = vector.load %arg3[%c0_14, %c0_15] : memref<1x128xf32, #tpu.memory_space<vmem>>, vector<1x128xf32>
    %28 = vector.broadcast %27 : vector<1x128xf32> to vector<32x128xf32>
    %29 = arith.addf %26, %28 : vector<32x128xf32>
    %cst_16 = arith.constant 0.000000e+00 : f32
    %30 = vector.broadcast %cst_16 : f32 to vector<32x128xf32>
    %31 = arith.maximumf %29, %30 : vector<32x128xf32>
    %32 = arith.truncf %31 : vector<32x128xf32> to vector<32x128xbf16>
    %c2_17 = arith.constant 2 : index
    %c0_18 = arith.constant 0 : index
    %c0_19 = arith.constant 0 : index
    %33 = vector.load %arg4[%c2_17, %c0_18, %c0_19] : memref<3x128x128xbf16, #tpu.memory_space<vmem>>, vector<1x128x128xbf16>
    %34 = vector.shape_cast %33 : vector<1x128x128xbf16> to vector<128x128xbf16>
    %cst_20 = arith.constant dense<0.000000e+00> : vector<32x128xf32>
    %35 = tpu.matmul %32, %34, %cst_20 {dimension_numbers = #tpu.dot_dimension_numbers<[1], [0], [0], [1], [0, 0, 1, 1], [], []>} : vector<32x128xbf16>, vector<128x128xbf16>, vector<32x128xf32> -> vector<32x128xf32>
    %c1_i32_21 = arith.constant 1 : i32
    %36 = tpu.dynamic_rotate %31 by %c1_i32_21 dim 0 : vector<32x128xf32>, i32 -> vector<32x128xf32>
    %cst_22 = arith.constant 0.000000e+00 : f32
    %37 = vector.broadcast %cst_22 : f32 to vector<32x128xf32>
    %38 = arith.select %3, %36, %37 : vector<32x128xi1>, vector<32x128xf32>
    %39 = arith.truncf %38 : vector<32x128xf32> to vector<32x128xbf16>
    %c1_23 = arith.constant 1 : index
    %c0_24 = arith.constant 0 : index
    %c0_25 = arith.constant 0 : index
    %40 = vector.load %arg4[%c1_23, %c0_24, %c0_25] : memref<3x128x128xbf16, #tpu.memory_space<vmem>>, vector<1x128x128xbf16>
    %41 = vector.shape_cast %40 : vector<1x128x128xbf16> to vector<128x128xbf16>
    %cst_26 = arith.constant dense<0.000000e+00> : vector<32x128xf32>
    %42 = tpu.matmul %39, %41, %cst_26 {dimension_numbers = #tpu.dot_dimension_numbers<[1], [0], [0], [1], [0, 0, 1, 1], [], []>} : vector<32x128xbf16>, vector<128x128xbf16>, vector<32x128xf32> -> vector<32x128xf32>
    %43 = arith.addf %35, %42 : vector<32x128xf32>
    %c2_i32_27 = arith.constant 2 : i32
    %44 = tpu.dynamic_rotate %31 by %c2_i32_27 dim 0 : vector<32x128xf32>, i32 -> vector<32x128xf32>
    %cst_28 = arith.constant 0.000000e+00 : f32
    %45 = vector.broadcast %cst_28 : f32 to vector<32x128xf32>
    %46 = arith.select %5, %44, %45 : vector<32x128xi1>, vector<32x128xf32>
    %47 = arith.truncf %46 : vector<32x128xf32> to vector<32x128xbf16>
    %c0_29 = arith.constant 0 : index
    %c0_30 = arith.constant 0 : index
    %c0_31 = arith.constant 0 : index
    %48 = vector.load %arg4[%c0_29, %c0_30, %c0_31] : memref<3x128x128xbf16, #tpu.memory_space<vmem>>, vector<1x128x128xbf16>
    %49 = vector.shape_cast %48 : vector<1x128x128xbf16> to vector<128x128xbf16>
    %cst_32 = arith.constant dense<0.000000e+00> : vector<32x128xf32>
    %50 = tpu.matmul %47, %49, %cst_32 {dimension_numbers = #tpu.dot_dimension_numbers<[1], [0], [0], [1], [0, 0, 1, 1], [], []>} : vector<32x128xbf16>, vector<128x128xbf16>, vector<32x128xf32> -> vector<32x128xf32>
    %51 = arith.addf %43, %50 : vector<32x128xf32>
    %c0_33 = arith.constant 0 : index
    %c0_34 = arith.constant 0 : index
    %52 = vector.load %arg5[%c0_33, %c0_34] : memref<1x128xf32, #tpu.memory_space<vmem>>, vector<1x128xf32>
    %53 = vector.broadcast %52 : vector<1x128xf32> to vector<32x128xf32>
    %54 = arith.addf %51, %53 : vector<32x128xf32>
    %cst_35 = arith.constant 0.000000e+00 : f32
    %55 = vector.broadcast %cst_35 : f32 to vector<32x128xf32>
    %56 = arith.maximumf %54, %55 : vector<32x128xf32>
    %c0_36 = arith.constant 0 : index
    %c0_37 = arith.constant 0 : index
    %57 = vector.load %arg6[%c0_36, %c0_37] : memref<128x128xbf16, #tpu.memory_space<vmem>>, vector<128x128xbf16>
    %cst_38 = arith.constant dense<0.000000e+00> : vector<32x128xf32>
    %58 = tpu.matmul %7, %57, %cst_38 {dimension_numbers = #tpu.dot_dimension_numbers<[1], [0], [0], [1], [0, 0, 1, 1], [], []>} : vector<32x128xbf16>, vector<128x128xbf16>, vector<32x128xf32> -> vector<32x128xf32>
    %c0_39 = arith.constant 0 : index
    %c0_40 = arith.constant 0 : index
    %59 = vector.load %arg7[%c0_39, %c0_40] : memref<1x128xf32, #tpu.memory_space<vmem>>, vector<1x128xf32>
    %60 = vector.broadcast %59 : vector<1x128xf32> to vector<32x128xf32>
    %61 = arith.addf %58, %60 : vector<32x128xf32>
    %62 = arith.addf %61, %56 : vector<32x128xf32>
    %63 = arith.truncf %62 : vector<32x128xf32> to vector<32x128xbf16>
    %c2_41 = arith.constant 2 : index
    %c0_42 = arith.constant 0 : index
    %c0_43 = arith.constant 0 : index
    %64 = vector.load %arg8[%c2_41, %c0_42, %c0_43] : memref<3x128x128xbf16, #tpu.memory_space<vmem>>, vector<1x128x128xbf16>
    %65 = vector.shape_cast %64 : vector<1x128x128xbf16> to vector<128x128xbf16>
    %cst_44 = arith.constant dense<0.000000e+00> : vector<32x128xf32>
    %66 = tpu.matmul %63, %65, %cst_44 {dimension_numbers = #tpu.dot_dimension_numbers<[1], [0], [0], [1], [0, 0, 1, 1], [], []>} : vector<32x128xbf16>, vector<128x128xbf16>, vector<32x128xf32> -> vector<32x128xf32>
    %c1_i32_45 = arith.constant 1 : i32
    %67 = tpu.dynamic_rotate %62 by %c1_i32_45 dim 0 : vector<32x128xf32>, i32 -> vector<32x128xf32>
    %cst_46 = arith.constant 0.000000e+00 : f32
    %68 = vector.broadcast %cst_46 : f32 to vector<32x128xf32>
    %69 = arith.select %3, %67, %68 : vector<32x128xi1>, vector<32x128xf32>
    %70 = arith.truncf %69 : vector<32x128xf32> to vector<32x128xbf16>
    %c1_47 = arith.constant 1 : index
    %c0_48 = arith.constant 0 : index
    %c0_49 = arith.constant 0 : index
    %71 = vector.load %arg8[%c1_47, %c0_48, %c0_49] : memref<3x128x128xbf16, #tpu.memory_space<vmem>>, vector<1x128x128xbf16>
    %72 = vector.shape_cast %71 : vector<1x128x128xbf16> to vector<128x128xbf16>
    %cst_50 = arith.constant dense<0.000000e+00> : vector<32x128xf32>
    %73 = tpu.matmul %70, %72, %cst_50 {dimension_numbers = #tpu.dot_dimension_numbers<[1], [0], [0], [1], [0, 0, 1, 1], [], []>} : vector<32x128xbf16>, vector<128x128xbf16>, vector<32x128xf32> -> vector<32x128xf32>
    %74 = arith.addf %66, %73 : vector<32x128xf32>
    %c2_i32_51 = arith.constant 2 : i32
    %75 = tpu.dynamic_rotate %62 by %c2_i32_51 dim 0 : vector<32x128xf32>, i32 -> vector<32x128xf32>
    %cst_52 = arith.constant 0.000000e+00 : f32
    %76 = vector.broadcast %cst_52 : f32 to vector<32x128xf32>
    %77 = arith.select %5, %75, %76 : vector<32x128xi1>, vector<32x128xf32>
    %78 = arith.truncf %77 : vector<32x128xf32> to vector<32x128xbf16>
    %c0_53 = arith.constant 0 : index
    %c0_54 = arith.constant 0 : index
    %c0_55 = arith.constant 0 : index
    %79 = vector.load %arg8[%c0_53, %c0_54, %c0_55] : memref<3x128x128xbf16, #tpu.memory_space<vmem>>, vector<1x128x128xbf16>
    %80 = vector.shape_cast %79 : vector<1x128x128xbf16> to vector<128x128xbf16>
    %cst_56 = arith.constant dense<0.000000e+00> : vector<32x128xf32>
    %81 = tpu.matmul %78, %80, %cst_56 {dimension_numbers = #tpu.dot_dimension_numbers<[1], [0], [0], [1], [0, 0, 1, 1], [], []>} : vector<32x128xbf16>, vector<128x128xbf16>, vector<32x128xf32> -> vector<32x128xf32>
    %82 = arith.addf %74, %81 : vector<32x128xf32>
    %c0_57 = arith.constant 0 : index
    %c0_58 = arith.constant 0 : index
    %83 = vector.load %arg9[%c0_57, %c0_58] : memref<1x128xf32, #tpu.memory_space<vmem>>, vector<1x128xf32>
    %84 = vector.broadcast %83 : vector<1x128xf32> to vector<32x128xf32>
    %85 = arith.addf %82, %84 : vector<32x128xf32>
    %cst_59 = arith.constant 0.000000e+00 : f32
    %86 = vector.broadcast %cst_59 : f32 to vector<32x128xf32>
    %87 = arith.maximumf %85, %86 : vector<32x128xf32>
    %88 = arith.truncf %87 : vector<32x128xf32> to vector<32x128xbf16>
    %c2_60 = arith.constant 2 : index
    %c0_61 = arith.constant 0 : index
    %c0_62 = arith.constant 0 : index
    %89 = vector.load %arg10[%c2_60, %c0_61, %c0_62] : memref<3x128x128xbf16, #tpu.memory_space<vmem>>, vector<1x128x128xbf16>
    %90 = vector.shape_cast %89 : vector<1x128x128xbf16> to vector<128x128xbf16>
    %cst_63 = arith.constant dense<0.000000e+00> : vector<32x128xf32>
    %91 = tpu.matmul %88, %90, %cst_63 {dimension_numbers = #tpu.dot_dimension_numbers<[1], [0], [0], [1], [0, 0, 1, 1], [], []>} : vector<32x128xbf16>, vector<128x128xbf16>, vector<32x128xf32> -> vector<32x128xf32>
    %c1_i32_64 = arith.constant 1 : i32
    %92 = tpu.dynamic_rotate %87 by %c1_i32_64 dim 0 : vector<32x128xf32>, i32 -> vector<32x128xf32>
    %cst_65 = arith.constant 0.000000e+00 : f32
    %93 = vector.broadcast %cst_65 : f32 to vector<32x128xf32>
    %94 = arith.select %3, %92, %93 : vector<32x128xi1>, vector<32x128xf32>
    %95 = arith.truncf %94 : vector<32x128xf32> to vector<32x128xbf16>
    %c1_66 = arith.constant 1 : index
    %c0_67 = arith.constant 0 : index
    %c0_68 = arith.constant 0 : index
    %96 = vector.load %arg10[%c1_66, %c0_67, %c0_68] : memref<3x128x128xbf16, #tpu.memory_space<vmem>>, vector<1x128x128xbf16>
    %97 = vector.shape_cast %96 : vector<1x128x128xbf16> to vector<128x128xbf16>
    %cst_69 = arith.constant dense<0.000000e+00> : vector<32x128xf32>
    %98 = tpu.matmul %95, %97, %cst_69 {dimension_numbers = #tpu.dot_dimension_numbers<[1], [0], [0], [1], [0, 0, 1, 1], [], []>} : vector<32x128xbf16>, vector<128x128xbf16>, vector<32x128xf32> -> vector<32x128xf32>
    %99 = arith.addf %91, %98 : vector<32x128xf32>
    %c2_i32_70 = arith.constant 2 : i32
    %100 = tpu.dynamic_rotate %87 by %c2_i32_70 dim 0 : vector<32x128xf32>, i32 -> vector<32x128xf32>
    %cst_71 = arith.constant 0.000000e+00 : f32
    %101 = vector.broadcast %cst_71 : f32 to vector<32x128xf32>
    %102 = arith.select %5, %100, %101 : vector<32x128xi1>, vector<32x128xf32>
    %103 = arith.truncf %102 : vector<32x128xf32> to vector<32x128xbf16>
    %c0_72 = arith.constant 0 : index
    %c0_73 = arith.constant 0 : index
    %c0_74 = arith.constant 0 : index
    %104 = vector.load %arg10[%c0_72, %c0_73, %c0_74] : memref<3x128x128xbf16, #tpu.memory_space<vmem>>, vector<1x128x128xbf16>
    %105 = vector.shape_cast %104 : vector<1x128x128xbf16> to vector<128x128xbf16>
    %cst_75 = arith.constant dense<0.000000e+00> : vector<32x128xf32>
    %106 = tpu.matmul %103, %105, %cst_75 {dimension_numbers = #tpu.dot_dimension_numbers<[1], [0], [0], [1], [0, 0, 1, 1], [], []>} : vector<32x128xbf16>, vector<128x128xbf16>, vector<32x128xf32> -> vector<32x128xf32>
    %107 = arith.addf %99, %106 : vector<32x128xf32>
    %c0_76 = arith.constant 0 : index
    %c0_77 = arith.constant 0 : index
    %108 = vector.load %arg11[%c0_76, %c0_77] : memref<1x128xf32, #tpu.memory_space<vmem>>, vector<1x128xf32>
    %109 = vector.broadcast %108 : vector<1x128xf32> to vector<32x128xf32>
    %110 = arith.addf %107, %109 : vector<32x128xf32>
    %cst_78 = arith.constant 0.000000e+00 : f32
    %111 = vector.broadcast %cst_78 : f32 to vector<32x128xf32>
    %112 = arith.maximumf %110, %111 : vector<32x128xf32>
    %c0_79 = arith.constant 0 : index
    %c0_80 = arith.constant 0 : index
    %113 = vector.load %arg12[%c0_79, %c0_80] : memref<128x128xbf16, #tpu.memory_space<vmem>>, vector<128x128xbf16>
    %cst_81 = arith.constant dense<0.000000e+00> : vector<32x128xf32>
    %114 = tpu.matmul %63, %113, %cst_81 {dimension_numbers = #tpu.dot_dimension_numbers<[1], [0], [0], [1], [0, 0, 1, 1], [], []>} : vector<32x128xbf16>, vector<128x128xbf16>, vector<32x128xf32> -> vector<32x128xf32>
    %c0_82 = arith.constant 0 : index
    %c0_83 = arith.constant 0 : index
    %115 = vector.load %arg13[%c0_82, %c0_83] : memref<1x128xf32, #tpu.memory_space<vmem>>, vector<1x128xf32>
    %116 = vector.broadcast %115 : vector<1x128xf32> to vector<32x128xf32>
    %117 = arith.addf %114, %116 : vector<32x128xf32>
    %118 = arith.addf %117, %112 : vector<32x128xf32>
    %c0_84 = arith.constant 0 : index
    %c0_85 = arith.constant 0 : index
    %119 = vector.load %arg14[%c0_84, %c0_85] : memref<32x128xf32, #tpu.memory_space<vmem>>, vector<32x128xf32>
    tpu.vector_store %arg14[%c0_84, %c0_85], %118 {strides = array<i32>} : memref<32x128xf32, #tpu.memory_space<vmem>>, vector<32x128xf32>,
    return
  }
  func.func @transform_0(%arg0: i32) -> (i32, i32) {
    %c0_i32 = arith.constant 0 : i32
    %c0_i32_0 = arith.constant 0 : i32
    return %arg0, %c0_i32 : i32, i32
  }
  func.func @transform_1(%arg0: i32) -> (i32, i32, i32) {
    %c0_i32 = arith.constant 0 : i32
    %c0_i32_0 = arith.constant 0 : i32
    %c0_i32_1 = arith.constant 0 : i32
    %c0_i32_2 = arith.constant 0 : i32
    return %c0_i32, %c0_i32_0, %c0_i32_1 : i32, i32, i32
  }
  func.func @transform_2(%arg0: i32) -> (i32, i32) {
    %c0_i32 = arith.constant 0 : i32
    %c0_i32_0 = arith.constant 0 : i32
    %c0_i32_1 = arith.constant 0 : i32
    return %c0_i32, %c0_i32_0 : i32, i32
  }
  func.func @transform_3(%arg0: i32) -> (i32, i32, i32) {
    %c0_i32 = arith.constant 0 : i32
    %c0_i32_0 = arith.constant 0 : i32
    %c0_i32_1 = arith.constant 0 : i32
    %c0_i32_2 = arith.constant 0 : i32
    return %c0_i32, %c0_i32_0, %c0_i32_1 : i32, i32, i32
  }
  func.func @transform_4(%arg0: i32) -> (i32, i32) {
    %c0_i32 = arith.constant 0 : i32
    %c0_i32_0 = arith.constant 0 : i32
    %c0_i32_1 = arith.constant 0 : i32
    return %c0_i32, %c0_i32_0 : i32, i32
  }
  func.func @transform_5(%arg0: i32) -> (i32, i32) {
    %c0_i32 = arith.constant 0 : i32
    %c0_i32_0 = arith.constant 0 : i32
    %c0_i32_1 = arith.constant 0 : i32
    return %c0_i32, %c0_i32_0 : i32, i32
  }
  func.func @transform_6(%arg0: i32) -> (i32, i32) {
    %c0_i32 = arith.constant 0 : i32
    %c0_i32_0 = arith.constant 0 : i32
    %c0_i32_1 = arith.constant 0 : i32
    return %c0_i32, %c0_i32_0 : i32, i32
  }
  func.func @transform_7(%arg0: i32) -> (i32, i32, i32) {
    %c0_i32 = arith.constant 0 : i32
    %c0_i32_0 = arith.constant 0 : i32
    %c0_i32_1 = arith.constant 0 : i32
    %c0_i32_2 = arith.constant 0 : i32
    return %c0_i32, %c0_i32_0, %c0_i32_1 : i32, i32, i32
  }
  func.func @transform_8(%arg0: i32) -> (i32, i32) {
    %c0_i32 = arith.constant 0 : i32
    %c0_i32_0 = arith.constant 0 : i32
    %c0_i32_1 = arith.constant 0 : i32
    return %c0_i32, %c0_i32_0 : i32, i32
  }
  func.func @transform_9(%arg0: i32) -> (i32, i32, i32) {
    %c0_i32 = arith.constant 0 : i32
    %c0_i32_0 = arith.constant 0 : i32
    %c0_i32_1 = arith.constant 0 : i32
    %c0_i32_2 = arith.constant 0 : i32
    return %c0_i32, %c0_i32_0, %c0_i32_1 : i32, i32, i32
  }
  func.func @transform_10(%arg0: i32) -> (i32, i32) {
    %c0_i32 = arith.constant 0 : i32
    %c0_i32_0 = arith.constant 0 : i32
    %c0_i32_1 = arith.constant 0 : i32
    return %c0_i32, %c0_i32_0 : i32, i32
  }
  func.func @transform_11(%arg0: i32) -> (i32, i32) {
    %c0_i32 = arith.constant 0 : i32
    %c0_i32_0 = arith.constant 0 : i32
    %c0_i32_1 = arith.constant 0 : i32
    return %c0_i32, %c0_i32_0 : i32, i32
  }
  func.func @transform_12(%arg0: i32) -> (i32, i32) {
    %c0_i32 = arith.constant 0 : i32
    %c0_i32_0 = arith.constant 0 : i32
    %c0_i32_1 = arith.constant 0 : i32
    return %c0_i32, %c0_i32_0 : i32, i32
  }
  func.func @transform_13(%arg0: i32) -> (i32, i32) {
    %c0_i32 = arith.constant 0 : i32
    %c0_i32_0 = arith.constant 0 : i32
    return %arg0, %c0_i32 : i32, i32
  }
}

</mosaic_0001>

<bundles_post_ra>
// kernel: tpu_custom_call.1
= control target key start
LH: loop header
LB: loop body
LE: loop exit
PB: predicated region body
PF: predicated region fallthrough
CT: control target
= control target key end

     0   :  { %18 = vsyncpa [#allocation3], 0  ;;  %s3322_s0 = inlined_call_operand.hbm [shape: f32[32,128], index: 0, kind: input, shape index: {}]   ;;  %s3323_s1 = inlined_call_operand.hbm [shape: bf16[3,128,128], index: 1, kind: input, shape index: {}]   ;;  %s3324_s2 = inlined_call_operand.vmem [shape: f32[1,128], index: 2, kind: input, shape index: {}]   ;;  %s3325_s3 = inlined_call_operand.hbm [shape: bf16[3,128,128], index: 3, kind: input, shape index: {}]   ;;  %s3326_s4 = inlined_call_operand.vmem [shape: f32[1,128], index: 4, kind: input, shape index: {}]   ;;  %s3327_s5 = inlined_call_operand.hbm [shape: bf16[128,128], index: 5, kind: input, shape index: {}]   ;;  %s3328_s6 = inlined_call_operand.vmem [shape: f32[1,128], index: 6, kind: input, shape index: {}]   ;;  %s3329_s7 = inlined_call_operand.hbm [shape: bf16[3,128,128], index: 7, kind: input, shape index: {}]   ;;  %s3330_s8 = inlined_call_operand.vmem [shape: f32[1,128], index: 8, kind: input, shape index: {}]   ;;  %s3331_s9 = inlined_call_operand.hbm [shape: bf16[3,128,128], index: 9, kind: input, shape index: {}]   ;;  %s3332_s10 = inlined_call_operand.vmem [shape: f32[1,128], index: 10, kind: input, shape index: {}]   ;;  %s3333_s11 = inlined_call_operand.hbm [shape: bf16[128,128], index: 11, kind: input, shape index: {}]   ;;  %s3334_s12 = inlined_call_operand.vmem [shape: f32[1,128], index: 12, kind: input, shape index: {}]   ;;  %s3335_s13 = inlined_call_operand.hbm [shape: f32[32,128], index: 13, kind: output, shape index: {}]  }
   0x1   :  { %19 = vsyncpa [#allocation6], 0 }
   0x2   :  { %20 = vsyncpa [#allocation9], 0 }
   0x3   :  { %21 = vsyncpa [#allocation12], 0 }
   0x4   :  { %22 = vsyncpa [#allocation4], 0  ;;  %s2915_s25 = smov [#allocation5]   ;;  %s2729_s29 = scalar_lea.hbm %s3323_s1, 3072 }
   0x5   :  { %s40_s26 = sshll.u32 %s2915_s25, 4  ;;  %p2730_p0 = scmp.ne.s32.totalorder %s3323_s1, %s2729_s29  ;;  %s41_s26 = int_to_ptr.vmem [resolvable:$true] %s40_s26 }
   0x6   :  { %p2733_p1 = scmp.lt.u32.totalorder %s2729_s29, %s3323_s1 }
   0x8   :  { %p2735_p2 = pnand %p2733_p1, %p2730_p0 }
   0xa   :  { %2738 = shalt.err (!%p2735_p2)
}
   0xb   :  { %s2739_s17 = scalar_lea.vmem %s41_s26, 3072  ;;  %p2744_p4 = scmp.lt.s32.totalorder %s41_s26, %s41_s26 }
   0xc   :  { %p2740_p3 = scmp.ne.s32.totalorder %s41_s26, %s2739_s17  ;;  %p2745_p5 = scmp.lt.s32.totalorder %s2739_s17, %s2739_s17 }
   0xe   :  { %p2746_p6 = por %p2745_p5, %p2744_p4 }
  0x10   :  { %p2747_p7 = pnand %p2746_p6, %p2740_p3 }
  0x12   :  { %2750 = shalt.err (!%p2747_p7)
}
  0x13   :  { %s2916_s18 = smov 64   ;;  %s2917_s19 = smov 4  }
  0x14   :  { %46 = dma.hbm_to_vmem [thread:$0]  %s3323_s1, 3072, %s41_s26, [#allocation6], %s2916_s18, %s2916_s18, %s2917_s19  }
  0x15   :  { %s2918_s22 = smov [#allocation8]   ;;  %s2919_s24 = smov [#allocation11]  }
  0x16   :  { %s68_s23 = sshll.u32 %s2918_s22, 4  ;;  %s96_s25 = sshll.u32 %s2919_s24, 4  ;;  %s69_s23 = int_to_ptr.vmem [resolvable:$true] %s68_s23  ;;  %s97_s25 = int_to_ptr.vmem [resolvable:$true] %s96_s25 }
  0x17   :  { %s2751_s29 = scalar_lea.hbm %s3327_s5, 1024 }
  0x18   :  { %p2752_p8 = scmp.ne.s32.totalorder %s3327_s5, %s2751_s29  ;;  %p2755_p9 = scmp.lt.u32.totalorder %s2751_s29, %s3327_s5 }
  0x1a   :  { %p2757_p10 = pnand %p2755_p9, %p2752_p8 }
  0x1c   :  { %2760 = shalt.err (!%p2757_p10)
}
  0x1d   :  { %s2761_s1 = scalar_lea.vmem %s69_s23, 1024  ;;  %p2766_p12 = scmp.lt.s32.totalorder %s69_s23, %s69_s23 }
  0x1e   :  { %p2762_p11 = scmp.ne.s32.totalorder %s69_s23, %s2761_s1  ;;  %p2767_p13 = scmp.lt.s32.totalorder %s2761_s1, %s2761_s1 }
  0x20   :  { %p2768_p0 = por %p2767_p13, %p2766_p12 }
  0x22   :  { %p2769_p1 = pnand %p2768_p0, %p2762_p11 }
  0x24   :  { %2772 = shalt.err (!%p2769_p1)
}
  0x25   :  { %74 = dma.hbm_to_vmem [thread:$0]  %s3327_s5, 1024, %s69_s23, [#allocation9], %s2916_s18, %s2916_s18, %s2917_s19  }
  0x26   :  { %s2773_s22 = scalar_lea.hbm %s3331_s9, 3072 }
  0x27   :  { %p2774_p2 = scmp.ne.s32.totalorder %s3331_s9, %s2773_s22  ;;  %p2777_p3 = scmp.lt.u32.totalorder %s2773_s22, %s3331_s9 }
  0x29   :  { %p2779_p4 = pnand %p2777_p3, %p2774_p2 }
  0x2b   :  { %2782 = shalt.err (!%p2779_p4)
}
  0x2c   :  { %s2783_s30 = scalar_lea.vmem %s97_s25, 3072  ;;  %p2788_p6 = scmp.lt.s32.totalorder %s97_s25, %s97_s25 }
  0x2d   :  { %p2784_p5 = scmp.ne.s32.totalorder %s97_s25, %s2783_s30  ;;  %p2789_p7 = scmp.lt.s32.totalorder %s2783_s30, %s2783_s30 }
  0x2f   :  { %p2790_p8 = por %p2789_p7, %p2788_p6 }
  0x31   :  { %p2791_p9 = pnand %p2790_p8, %p2784_p5 }
  0x33   :  { %2794 = shalt.err (!%p2791_p9)
}
  0x34   :  { %102 = dma.hbm_to_vmem [thread:$0]  %s3331_s9, 3072, %s97_s25, [#allocation12], %s2916_s18, %s2916_s18, %s2917_s19  }
  0x35   :  { %s2920_s14 = smov [#allocation2]   ;;  %s2795_s26 = scalar_lea.hbm %s3322_s0, 512 }
  0x36   :  { %s28_s15 = sshll.u32 %s2920_s14, 4  ;;  %p2796_p10 = scmp.ne.s32.totalorder %s3322_s0, %s2795_s26  ;;  %s29_s15 = int_to_ptr.vmem [resolvable:$true] %s28_s15 }
  0x37   :  { %p2799_p11 = scmp.lt.u32.totalorder %s2795_s26, %s3322_s0 }
  0x39   :  { %p2801_p12 = pnand %p2799_p11, %p2796_p10 }
  0x3b   :  { %2804 = shalt.err (!%p2801_p12)
}
  0x3c   :  { %s2805_s24 = scalar_lea.vmem %s29_s15, 512  ;;  %p2810_p0 = scmp.lt.s32.totalorder %s29_s15, %s29_s15 }
  0x3d   :  { %p2806_p13 = scmp.ne.s32.totalorder %s29_s15, %s2805_s24  ;;  %p2811_p1 = scmp.lt.s32.totalorder %s2805_s24, %s2805_s24 }
  0x3f   :  { %p2812_p2 = por %p2811_p1, %p2810_p0 }
  0x41   :  { %p2813_p3 = pnand %p2812_p2, %p2806_p13 }
  0x43   :  { %2816 = shalt.err (!%p2813_p3)
}
  0x44   :  { %s2921_s9 = smov 128   ;;  %s2922_s25 = smov 8  }
  0x45   :  { %34 = dma.hbm_to_vmem [thread:$0]  %s3322_s0, 512, %s29_s15, [#allocation3], %s2921_s9, %s2921_s9, %s2922_s25  }
  0x46   :  { %s2923_s29 = smov [#allocation7]   ;;  %s2924_s5 = smov [#allocation10]  }
  0x47   :  { %s54_s30 = sshll.u32 %s2923_s29, 4  ;;  %s82_s23 = sshll.u32 %s2924_s5, 4  ;;  %s55_s30 = int_to_ptr.vmem [resolvable:$true] %s54_s30  ;;  %s3058_s23 = int_to_ptr.vmem [resolvable:$true] %s82_s23 }
  0x48   :  { %s2817_s1 = scalar_lea.hbm %s3325_s3, 3072 }
  0x49   :  { %p2818_p4 = scmp.ne.s32.totalorder %s3325_s3, %s2817_s1  ;;  %p2821_p5 = scmp.lt.u32.totalorder %s2817_s1, %s3325_s3 }
  0x4b   :  { %p2823_p6 = pnand %p2821_p5, %p2818_p4 }
  0x4d   :  { %2826 = shalt.err (!%p2823_p6)
}
  0x4e   :  { %s2827_s0 = scalar_lea.vmem %s55_s30, 3072  ;;  %p2832_p8 = scmp.lt.s32.totalorder %s55_s30, %s55_s30 }
  0x4f   :  { %p2828_p7 = scmp.ne.s32.totalorder %s55_s30, %s2827_s0  ;;  %p2833_p9 = scmp.lt.s32.totalorder %s2827_s0, %s2827_s0 }
  0x51   :  { %p2834_p10 = por %p2833_p9, %p2832_p8 }
  0x53   :  { %p2835_p11 = pnand %p2834_p10, %p2828_p7 }
  0x55   :  { %2838 = shalt.err (!%p2835_p11)
}
  0x56   :  { %60 = dma.hbm_to_vmem [thread:$0]  %s3325_s3, 3072, %s55_s30, [#allocation6], %s2916_s18, %s2916_s18, %s2917_s19  }
  0x57   :  { %s2839_s28 = scalar_lea.hbm %s3329_s7, 3072 }
  0x58   :  { %p2840_p12 = scmp.ne.s32.totalorder %s3329_s7, %s2839_s28  ;;  %p2843_p13 = scmp.lt.u32.totalorder %s2839_s28, %s3329_s7 }
  0x5a   :  { %p2845_p0 = pnand %p2843_p13, %p2840_p12 }
  0x5c   :  { %2848 = shalt.err (!%p2845_p0)
}
  0x5d   :  { %s2849_s1 = scalar_lea.vmem %s3058_s23, 3072  ;;  %p2854_p2 = scmp.lt.s32.totalorder %s3058_s23, %s3058_s23 }
  0x5e   :  { %p2850_p1 = scmp.ne.s32.totalorder %s3058_s23, %s2849_s1  ;;  %p2855_p3 = scmp.lt.s32.totalorder %s2849_s1, %s2849_s1 }
  0x60   :  { %p2856_p4 = por %p2855_p3, %p2854_p2 }
  0x62   :  { %p2857_p5 = pnand %p2856_p4, %p2850_p1 }
  0x64   :  { %2860 = shalt.err (!%p2857_p5)
}
  0x65   :  { %88 = dma.hbm_to_vmem [thread:$0]  %s3329_s7, 3072, %s3058_s23, [#allocation9], %s2916_s18, %s2916_s18, %s2917_s19  }
  0x66   :  { %s2925_s26 = smov [#allocation13]   ;;  %s2861_s0 = scalar_lea.hbm %s3333_s11, 1024 }
  0x67   :  { %s110_s17 = sshll.u32 %s2925_s26, 4  ;;  %p2862_p6 = scmp.ne.s32.totalorder %s3333_s11, %s2861_s0  ;;  %s111_s17 = int_to_ptr.vmem [resolvable:$true] %s110_s17 }
  0x68   :  { %p2865_p7 = scmp.lt.u32.totalorder %s2861_s0, %s3333_s11 }
  0x6a   :  { %p2867_p8 = pnand %p2865_p7, %p2862_p6 }
  0x6c   :  { %2870 = shalt.err (!%p2867_p8)
}
  0x6d   :  { %s2871_s28 = scalar_lea.vmem %s111_s17, 1024  ;;  %p2876_p10 = scmp.lt.s32.totalorder %s111_s17, %s111_s17 }
  0x6e   :  { %p2872_p9 = scmp.ne.s32.totalorder %s111_s17, %s2871_s28  ;;  %p2877_p11 = scmp.lt.s32.totalorder %s2871_s28, %s2871_s28 }
  0x70   :  { %p2878_p12 = por %p2877_p11, %p2876_p10 }
  0x72   :  { %p2879_p13 = pnand %p2878_p12, %p2872_p9 }
  0x74   :  { %2882 = shalt.err (!%p2879_p13)
}
  0x75   :  { %116 = dma.hbm_to_vmem [thread:$0]  %s3333_s11, 1024, %s111_s17, [#allocation12], %s2916_s18, %s2916_s18, %s2917_s19  }
  0x76   :  { %2905 = dma.done.wait [#allocation3], 512  }
  0x77   :  { %2906 = vsyncadd [#allocation3], 4294966784 }
  0x78   :  { %2907 = dma.done.wait [#allocation6], 6144  }
  0x79   :  { %2908 = vsyncadd [#allocation6], 4294961152 }
  0x7a   :  { %2909 = dma.done.wait [#allocation9], 4096  }
  0x7b   :  { %2910 = vsyncadd [#allocation9], 4294963200 }
  0x7c   :  { %2911 = dma.done.wait [#allocation12], 4096  }
  0x7d   :  { %2912 = vsyncadd [#allocation12], 4294963200  ;;  %v2617_v0 = vld [vmem:[#allocation5 + $0x40] sm:$0xff]   ;;  %v141_v1 = vlaneseq  ;;  %v2618_v2 = vld [vmem:[#allocation5 + $0x48] sm:$0xff]   ;;  %vm2926_vm2 = vmmov 1  }
  0x7e   :  { %2292 = vmatprep.subr.bf16.mxu0 %v2617_v0  ;;  %v2619_v3 = vld [vmem:[#allocation5 + $0x50] sm:$0xff]   ;;  %v2620_v5 = vld [vmem:[#allocation5 + $0x58] sm:$0xff]   ;;  %v3113_v6 = vld [vmem:[#allocation2] sm:$0xff] }
  0x7f   :  { %2293 = vmatpush3.bf16.msra.mxu0 %v2617_v0  ;;  %v3110_v4 = vshrl.u32 %v141_v1, 7  ;;  %v3115_v7 = vld [vmem:[#allocation2 + $0x8] sm:$0xff]  ;;  %v3117_v8 = vld [vmem:[#allocation2 + $0x18] sm:$0xff]  ;;  %v171_v9 = vrot.slane %v3113_v6, 7  ;;  %v2621_v15 = vld [vmem:[#allocation5 + $0x60] sm:$0xff]   ;;  %v397_v27 = vrot.slane %v3113_v6, 6 }
  0x80   :  { %2294 = vmatprep.subr.bf16.mxu0 %v2618_v2  ;;  %v172_v10 = vrot.slane %v3115_v7, 7  ;;  %v174_v11 = vrot.slane %v3117_v8, 7  ;;  %v2622_v17 = vld [vmem:[#allocation5 + $0x68] sm:$0xff]   ;;  %v2623_v18 = vld [vmem:[#allocation5 + $0x70] sm:$0xff]   ;;  %v2624_v21 = vld [vmem:[#allocation5 + $0x78] sm:$0xff]   ;;  %v398_v28 = vrot.slane %v3115_v7, 6  ;;  %v3146_v33 = vpack.c.bf16 %v3115_v7, %v3113_v6 }
  0x81   :  { %vm144_vm0 = vcmp.ge.s32.totalorder %v3110_v4, 1  ;;  %vm175_vm1 = vcmp.lt.s32.totalorder %v3110_v4, 1  ;;  %v3134_v19 = vld [vmem:[#allocation2 + $0x10] sm:$0xff]  ;;  %v2641_v22 = vld [vmem:[#allocation7 + $0x40] sm:$0xff]   ;;  %v2642_v25 = vld [vmem:[#allocation7 + $0x48] sm:$0xff]   ;;  %v400_v29 = vrot.slane %v3117_v8, 6 }
  0x82   :  { %v178_v12 = vsel %vm175_vm1, %v171_v9, %v172_v10  ;;  %v179_v13 = vsel %vm175_vm1, %v174_v11, %v171_v9  ;;  %vm3128_vm3 = vmpackc.low %vm2926_vm2, %vm144_vm0  ;;  %v173_v20 = vrot.slane %v3134_v19, 7  ;;  %v2625_v26 = vld [vmem:[#allocation5 + $0x80] sm:$0xff]   ;;  %2352 = vmatprep.subr.bf16.mxu1 %v2641_v22  ;;  %v2626_v31 = vld [vmem:[#allocation5 + $0x88] sm:$0xff]   ;;  %vm146_vm4 = vcmp.ge.s32.totalorder %v3110_v4, 2 }
  0x83   :  { %2295 = vmatpush3.bf16.msra.mxu0 %v2618_v2  ;;  %v1995_v16 = vpack.c.bf16 %v178_v12, %v179_v13  ;;  %2353 = vmatpush3.bf16.msra.mxu1 %v2641_v22  ;;  %v2643_v32 = vld [vmem:[#allocation7 + $0x50] sm:$0xff]   ;;  %v2644_v34 = vld [vmem:[#allocation7 + $0x58] sm:$0xff]   ;;  %v2645_v36 = vld [vmem:[#allocation7 + $0x60] sm:$0xff]   ;;  %vm401_vm5 = vcmp.lt.s32.totalorder %v3110_v4, 2  ;;  %v3168_v46 = vpack.c.bf16 %v3117_v8, %v3134_v19  ;;  %v399_v54 = vrot.slane %v3134_v19, 6 }
  0x84   :  { %2296 = vmatprep.subr.bf16.mxu0 %v2619_v3  ;;  %v176_v23 = vsel %vm175_vm1, %v173_v20, %v174_v11  ;;  %v177_v24 = vsel %vm175_vm1, %v172_v10, %v173_v20  ;;  %2354 = vmatprep.subr.bf16.mxu1 %v2642_v25  ;;  %v2627_v35 = vld [vmem:[#allocation5 + $0x90] sm:$0xff]   ;;  %v2628_v37 = vld [vmem:[#allocation5 + $0x98] sm:$0xff]   ;;  %v2629_v38 = vld [vmem:[#allocation5 + $0xa0] sm:$0xff]   ;;  %v404_v44 = vsel %vm401_vm5, %v397_v27, %v398_v28 }
  0x85   :  { %2308 = vmatprep.mubr.msk.bf16.mxu0 %vm3128_vm3, %v1995_v16  ;;  %v1998_v30 = vpack.c.bf16 %v176_v23, %v177_v24  ;;  %v2630_v39 = vld [vmem:[#allocation5 + $0xa8] sm:$0xff]   ;;  %v2631_v40 = vld [vmem:[#allocation5 + $0xb0] sm:$0xff]   ;;  %v2632_v41 = vld [vmem:[#allocation5 + $0xb8] sm:$0xff]   ;;  %v405_v45 = vsel %vm401_vm5, %v400_v29, %v397_v27  ;;  %v402_v56 = vsel %vm401_vm5, %v399_v54, %v400_v29  ;;  %v403_v57 = vsel %vm401_vm5, %v398_v28, %v399_v54 }
  0x86   :  { %vm3154_vm6 = vmpackc.low %vm2926_vm2, %vm146_vm4  ;;  %v2633_v43 = vld [vmem:[#allocation5] sm:$0xff]   ;;  %v2634_v47 = vld [vmem:[#allocation5 + $0x8] sm:$0xff]   ;;  %v2017_v48 = vpack.c.bf16 %v404_v44, %v405_v45  ;;  %v2020_v58 = vpack.c.bf16 %v402_v56, %v403_v57 }
  0x87   :  { %2297 = vmatpush3.bf16.msra.mxu0 %v2619_v3  ;;  %2355 = vmatpush3.bf16.msra.mxu1 %v2642_v25  ;;  %v2635_v49 = vld [vmem:[#allocation5 + $0x10] sm:$0xff]   ;;  %v2636_v50 = vld [vmem:[#allocation5 + $0x18] sm:$0xff]   ;;  %v2637_v51 = vld [vmem:[#allocation5 + $0x20] sm:$0xff]  }
  0x88   :  { %2298 = vmatprep.subr.bf16.mxu0 %v2620_v5  ;;  %2356 = vmatprep.subr.bf16.mxu1 %v2643_v32  ;;  %v2638_v52 = vld [vmem:[#allocation5 + $0x28] sm:$0xff]   ;;  %v2639_v53 = vld [vmem:[#allocation5 + $0x30] sm:$0xff]   ;;  %v2640_v55 = vld [vmem:[#allocation5 + $0x38] sm:$0xff]  }
  0x89   :  { %v2646_v59 = vld [vmem:[#allocation7 + $0x68] sm:$0xff]   ;;  %v2647_v60 = vld [vmem:[#allocation7 + $0x70] sm:$0xff]   ;;  %v2648_v61 = vld [vmem:[#allocation7 + $0x78] sm:$0xff]  }
  0x8a   :  { %v3185_v62 = vld [vmem:[#allocation7 + $0x80] sm:$0xff]   ;;  %v2659_v0 = vld [vmem:[#allocation8 + $0x8] sm:$0xff]   ;;  %v2661_v1 = vld [vmem:[#allocation8 + $0x10] sm:$0xff]  }
  0x8b   :  { %2299 = vmatpush3.bf16.msra.mxu0 %v2620_v5  ;;  %2357 = vmatpush3.bf16.msra.mxu1 %v2643_v32  ;;  %v2657_v63 = vld [vmem:[#allocation8] sm:$0xff]   ;;  %v2663_v2 = vld [vmem:[#allocation8 + $0x18] sm:$0xff]   ;;  %v2667_v5 = vld [vmem:[#allocation8 + $0x28] sm:$0xff]  }
  0x8c   :  { %2300 = vmatprep.subr.bf16.mxu0 %v2621_v15  ;;  %2358 = vmatprep.subr.bf16.mxu1 %v2644_v34  ;;  %v2665_v3 = vld [vmem:[#allocation8 + $0x20] sm:$0xff]   ;;  %v2669_v6 = vld [vmem:[#allocation8 + $0x30] sm:$0xff]   ;;  %v2671_v7 = vld [vmem:[#allocation8 + $0x38] sm:$0xff]  }
  0x8d   :  { %v2022_v8 = vld [vmem:[%s3324_s2] ss:$0 sm:$0xff]  ;;  %v2650_v45 = vld [vmem:[#allocation7 + $0x88] sm:$0xff]   ;;  %v2662_v54 = vld [vmem:[#allocation7 + $0x10] sm:$0xff]  }
  0x8e   :  { %v2666_v56 = vld [vmem:[#allocation7 + $0x20] sm:$0xff]   ;;  %v2668_v57 = vld [vmem:[#allocation7 + $0x28] sm:$0xff]   ;;  %v2716_v4 = vld [vmem:[#allocation11 + $0x98] sm:$0xff]  }
  0x8f   :  { %2301 = vmatpush3.bf16.msra.mxu0 %v2621_v15  ;;  %2359 = vmatpush3.bf16.msra.mxu1 %v2644_v34 }
  0x90   :  { %2302 = vmatprep.subr.bf16.mxu0 %v2622_v17  ;;  %2360 = vmatprep.subr.bf16.mxu1 %v2645_v36 }
  0x93   :  { %2303 = vmatpush3.bf16.msra.mxu0 %v2622_v17  ;;  %2361 = vmatpush3.bf16.msra.mxu1 %v2645_v36 }
  0x94   :  { %2304 = vmatprep.subr.bf16.mxu0 %v2623_v18  ;;  %2362 = vmatprep.subr.bf16.mxu1 %v2646_v59 }
  0x97   :  { %2305 = vmatpush3.bf16.msra.mxu0 %v2623_v18  ;;  %2363 = vmatpush3.bf16.msra.mxu1 %v2646_v59  ;;  %v2672_v59 = vld [vmem:[#allocation7 + $0x38] sm:$0xff]  }
  0x98   :  { %2306 = vmatprep.subr.bf16.mxu0 %v2624_v21  ;;  %2364 = vmatprep.subr.bf16.mxu1 %v2647_v60 }
  0x9b   :  { %2307 = vmatpush3.bf16.msra.mxu0 %v2624_v21  ;;  %2365 = vmatpush3.bf16.msra.mxu1 %v2647_v60  ;;  %v2673_v60 = vld [vmem:[#allocation10 + $0x40] sm:$0xff]  }
  0x9c   :  { %2312 = vmatprep.subr.bf16.mxu0 %v2625_v26  ;;  %2366 = vmatprep.subr.bf16.mxu1 %v2648_v61 }
  0x9e   :  { %2309 = vmatmul.mubr.msk.bf16.vlgmr.msra.gmra.mrb[0].mxu0 %vm3128_vm3, %v1998_v30 }
  0x9f   :  { %2313 = vmatpush3.bf16.msra.mxu0 %v2625_v26  ;;  %2328 = vmatprep.mubr.bf16.mxu0 %v3146_v33 }
  0xa0   :  { %2314 = vmatprep.subr.bf16.mxu0 %v2626_v31  ;;  %2367 = vmatpush3.bf16.msra.mxu1 %v2648_v61  ;;  %v2674_v61 = vld [vmem:[#allocation10 + $0x48] sm:$0xff]  }
  0xa1   :  { %2372 = vmatprep.subr.bf16.mxu1 %v3185_v62 }
  0xa3   :  { %2315 = vmatpush3.bf16.msra.mxu0 %v2626_v31 }
  0xa4   :  { %2316 = vmatprep.subr.bf16.mxu0 %v2627_v35 }
  0xa7   :  { %2317 = vmatpush3.bf16.msra.mxu0 %v2627_v35 }
  0xa8   :  { %2318 = vmatprep.subr.bf16.mxu0 %v2628_v37 }
  0xab   :  { %2319 = vmatpush3.bf16.msra.mxu0 %v2628_v37 }
  0xac   :  { %2320 = vmatprep.subr.bf16.mxu0 %v2629_v38 }
  0xaf   :  { %2321 = vmatpush3.bf16.msra.mxu0 %v2629_v38 }
  0xb0   :  { %2322 = vmatprep.subr.bf16.mxu0 %v2630_v39 }
  0xb3   :  { %2323 = vmatpush3.bf16.msra.mxu0 %v2630_v39 }
  0xb4   :  { %2324 = vmatprep.subr.bf16.mxu0 %v2631_v40 }
  0xb7   :  { %2325 = vmatpush3.bf16.msra.mxu0 %v2631_v40 }
  0xb8   :  { %2326 = vmatprep.subr.bf16.mxu0 %v2632_v41 }
  0xbb   :  { %2327 = vmatpush3.bf16.msra.mxu0 %v2632_v41 }
  0xbc   :  { %2332 = vmatprep.subr.bf16.mxu0 %v2633_v43 }
  0xbe   :  { %2329 = vmatmul.mubr.bf16.vlgmr.msra.gmra.mrb[0].mxu0 %v3168_v46 }
  0xbf   :  { %2333 = vmatpush3.bf16.msra.mxu0 %v2633_v43  ;;  %2348 = vmatprep.mubr.msk.bf16.mxu0 %vm3154_vm6, %v2017_v48  ;;  %v2653_v48 = vld [vmem:[#allocation7 + $0xa0] sm:$0xff]  }
  0xc0   :  { %2334 = vmatprep.subr.bf16.mxu0 %v2634_v47 }
  0xc3   :  { %2335 = vmatpush3.bf16.msra.mxu0 %v2634_v47  ;;  %v2652_v47 = vld [vmem:[#allocation7 + $0x98] sm:$0xff]  }
  0xc4   :  { %2336 = vmatprep.subr.bf16.mxu0 %v2635_v49 }
  0xc7   :  { %2337 = vmatpush3.bf16.msra.mxu0 %v2635_v49  ;;  %v2654_v49 = vld [vmem:[#allocation7 + $0xa8] sm:$0xff]  }
  0xc8   :  { %2338 = vmatprep.subr.bf16.mxu0 %v2636_v50 }
  0xcb   :  { %2339 = vmatpush3.bf16.msra.mxu0 %v2636_v50  ;;  %v2655_v50 = vld [vmem:[#allocation7 + $0xb0] sm:$0xff]  }
  0xcc   :  { %2340 = vmatprep.subr.bf16.mxu0 %v2637_v51 }
  0xcf   :  { %2341 = vmatpush3.bf16.msra.mxu0 %v2637_v51  ;;  %v2656_v51 = vld [vmem:[#allocation7 + $0xb8] sm:$0xff]  }
  0xd0   :  { %2342 = vmatprep.subr.bf16.mxu0 %v2638_v52 }
  0xd3   :  { %2343 = vmatpush3.bf16.msra.mxu0 %v2638_v52  ;;  %v2658_v52 = vld [vmem:[#allocation7] sm:$0xff]  }
  0xd4   :  { %2344 = vmatprep.subr.bf16.mxu0 %v2639_v53 }
  0xd7   :  { %2345 = vmatpush3.bf16.msra.mxu0 %v2639_v53  ;;  %v2660_v53 = vld [vmem:[#allocation7 + $0x8] sm:$0xff]  }
  0xd8   :  { %2346 = vmatprep.subr.bf16.mxu0 %v2640_v55 }
  0xdb   :  { %2347 = vmatpush3.bf16.msra.mxu0 %v2640_v55  ;;  %v2664_v55 = vld [vmem:[#allocation7 + $0x18] sm:$0xff]  }
  0xdc   :  { %2412 = vmatprep.subr.bf16.mxu0 %v2657_v63 }
  0xde   :  { %2349 = vmatmul.mubr.msk.bf16.vlgmr.msra.gmra.mrb[0].mxu0 %vm3154_vm6, %v2020_v58  ;;  %v2670_v58 = vld [vmem:[#allocation7 + $0x30] sm:$0xff]  }
  0xdf   :  { %2428 = vmatprep.mubr.bf16.mxu0 %v3146_v33  ;;  %2413 = vmatpush3.bf16.msra.mxu0 %v2657_v63  ;;  %v2676_v63 = vld [vmem:[#allocation10 + $0x58] sm:$0xff]  }
  0xe0   :  { %2414 = vmatprep.subr.bf16.mxu0 %v2659_v0 }
  0xe3   :  { %2415 = vmatpush3.bf16.msra.mxu0 %v2659_v0  ;;  %v2677_v0 = vld [vmem:[#allocation10 + $0x60] sm:$0xff]  }
  0xe4   :  { %2416 = vmatprep.subr.bf16.mxu0 %v2661_v1 }
  0xe7   :  { %2417 = vmatpush3.bf16.msra.mxu0 %v2661_v1 }
  0xe8   :  { %2418 = vmatprep.subr.bf16.mxu0 %v2663_v2 }
  0xeb   :  { %2419 = vmatpush3.bf16.msra.mxu0 %v2663_v2 }
  0xec   :  { %2420 = vmatprep.subr.bf16.mxu0 %v2665_v3 }
  0xef   :  { %2421 = vmatpush3.bf16.msra.mxu0 %v2665_v3 }
  0xf0   :  { %2422 = vmatprep.subr.bf16.mxu0 %v2667_v5 }
  0xf3   :  { %2423 = vmatpush3.bf16.msra.mxu0 %v2667_v5  ;;  %v2678_v5 = vld [vmem:[#allocation10 + $0x68] sm:$0xff]  }
  0xf4   :  { %2424 = vmatprep.subr.bf16.mxu0 %v2669_v6 }
  0xf7   :  { %2425 = vmatpush3.bf16.msra.mxu0 %v2669_v6 }
  0xf8   :  { %2426 = vmatprep.subr.bf16.mxu0 %v2671_v7 }
  0xfb   :  { %2427 = vmatpush3.bf16.msra.mxu0 %v2671_v7  ;;  %v2679_v7 = vld [vmem:[#allocation10 + $0x70] sm:$0xff]  }
  0xfe   :  { %2429 = vmatmul.mubr.bf16.vlgmr.msra.gmra.mrb[4].mxu0 %v3168_v46  ;;  %v2651_v46 = vld [vmem:[#allocation7 + $0x90] sm:$0xff]  }
 0x1b1   :  { %v2350_v9 = vpop.f32.mrb[0].mxu0 }
 0x1b2   :  { %v538_v10 = vadd.f32 %v2350_v9, %v2022_v8  ;;  %v510_v11 = vpop.f32.mrb[1].mxu0  ;;  %v3223_v9 = vld [vmem:[#allocation10 + $0x80] sm:$0xff]  }
 0x1b3   :  { %v536_v12 = vadd.f32 %v2022_v8, %v510_v11  ;;  %v2351_v13 = vpop.f32.mrb[2].mxu0  ;;  %v2706_v11 = vld [vmem:[#allocation11 + $0x48] sm:$0xff]  }
 0x1b4   :  { %v542_v15 = vmax.f32 %v538_v10, 0.0  ;;  %v539_v16 = vadd.f32 %v2351_v13, %v2022_v8  ;;  %v513_v17 = vpop.f32.mrb[3].mxu0  ;;  %v2705_v10 = vld [vmem:[#allocation11 + $0x40] sm:$0xff]   ;;  %v2708_v13 = vld [vmem:[#allocation11 + $0x58] sm:$0xff]  }
 0x1b5   :  { %v540_v18 = vmax.f32 %v536_v12, 0.0  ;;  %v537_v19 = vadd.f32 %v2022_v8, %v513_v17  ;;  %v2680_v8 = vld [vmem:[#allocation10 + $0x78] sm:$0xff]   ;;  %2492 = vmatprep.subr.bf16.mxu0 %v2705_v10  ;;  %v2707_v12 = vld [vmem:[#allocation11 + $0x50] sm:$0xff]   ;;  %v2059_v17 = vld [vmem:[%s3326_s4] ss:$0 sm:$0xff] }
 0x1b6   :  { %v543_v20 = vmax.f32 %v539_v16, 0.0  ;;  %v565_v21 = vrot.slane %v542_v15, 7  ;;  %v790_v25 = vrot.slane %v542_v15, 6  ;;  %2493 = vmatpush3.bf16.msra.mxu0 %v2705_v10  ;;  %v2060_v16 = vld [vmem:[%s3328_s6] ss:$0 sm:$0xff]  ;;  %v2694_v10 = vld [vmem:[#allocation10 + $0x28] sm:$0xff]  }
 0x1b7   :  { %v563_v22 = vrot.slane %v540_v18, 7  ;;  %v788_v23 = vrot.slane %v540_v18, 6  ;;  %v541_v24 = vmax.f32 %v537_v19, 0.0  ;;  %2494 = vmatprep.subr.bf16.mxu0 %v2706_v11 }
 0x1b8   :  { %v545_v26 = vpack.c.bf16 %v543_v20, %v542_v15  ;;  %v566_v27 = vrot.slane %v543_v20, 7  ;;  %v791_v28 = vrot.slane %v543_v20, 6  ;;  %v2709_v15 = vld [vmem:[#allocation11 + $0x60] sm:$0xff]  }
 0x1b9   :  { %v564_v29 = vrot.slane %v541_v24, 7  ;;  %v789_v30 = vrot.slane %v541_v24, 6  ;;  %v544_v31 = vpack.c.bf16 %v541_v24, %v540_v18 }
 0x1ba   :  { %v3194_v32 = vsel %vm401_vm5, %v790_v25, %v791_v28  ;;  %v570_v33 = vsel %vm175_vm1, %v566_v27, %v563_v22  ;;  %v567_v34 = vsel %vm175_vm1, %v565_v21, %v566_v27  ;;  %v795_v35 = vsel %vm401_vm5, %v791_v28, %v788_v23  ;;  %2495 = vmatpush3.bf16.msra.mxu0 %v2706_v11  ;;  %v2695_v11 = vld [vmem:[#allocation10 + $0x30] sm:$0xff]  }
 0x1bb   :  { %v3204_v36 = vsel %vm401_vm5, %v789_v30, %v790_v25  ;;  %v569_v37 = vsel %vm175_vm1, %v563_v22, %v564_v29  ;;  %v568_v38 = vsel %vm175_vm1, %v564_v29, %v565_v21  ;;  %v794_v39 = vsel %vm401_vm5, %v788_v23, %v789_v30  ;;  %2496 = vmatprep.subr.bf16.mxu0 %v2707_v12 }
 0x1bc   :  { %v2057_v40 = vpack.c.bf16 %v3194_v32, %v3204_v36  ;;  %v2032_v41 = vpack.c.bf16 %v569_v37, %v570_v33  ;;  %v2035_v43 = vpack.c.bf16 %v567_v34, %v568_v38  ;;  %v2054_v44 = vpack.c.bf16 %v794_v39, %v795_v35 }
 0x1be   :  { %2368 = vmatprep.mubr.msk.bf16.mxu1 %vm3128_vm3, %v2032_v41  ;;  %2497 = vmatpush3.bf16.msra.mxu0 %v2707_v12  ;;  %v2696_v12 = vld [vmem:[#allocation10 + $0x38] sm:$0xff]  }
 0x1bf   :  { %2369 = vmatmul.mubr.msk.bf16.vlgmr.msra.gmra.mrb[0].mxu1 %vm3128_vm3, %v2035_v43  ;;  %2498 = vmatprep.subr.bf16.mxu0 %v2708_v13 }
 0x1c0   :  { %2373 = vmatpush3.bf16.msra.mxu1 %v3185_v62  ;;  %2388 = vmatprep.mubr.bf16.mxu1 %v544_v31  ;;  %v2675_v62 = vld [vmem:[#allocation10 + $0x50] sm:$0xff]  }
 0x1c1   :  { %2374 = vmatprep.subr.bf16.mxu1 %v2650_v45 }
 0x1c2   :  { %2499 = vmatpush3.bf16.msra.mxu0 %v2708_v13  ;;  %v2697_v13 = vld [vmem:[#allocation13] sm:$0xff]  }
 0x1c3   :  { %2500 = vmatprep.subr.bf16.mxu0 %v2709_v15 }
 0x1c4   :  { %2375 = vmatpush3.bf16.msra.mxu1 %v2650_v45 }
 0x1c5   :  { %2376 = vmatprep.subr.bf16.mxu1 %v2651_v46 }
 0x1c6   :  { %2501 = vmatpush3.bf16.msra.mxu0 %v2709_v15  ;;  %v2698_v15 = vld [vmem:[#allocation13 + $0x8] sm:$0xff]  }
 0x1c8   :  { %2377 = vmatpush3.bf16.msra.mxu1 %v2651_v46 }
 0x1c9   :  { %2378 = vmatprep.subr.bf16.mxu1 %v2652_v47 }
 0x1cc   :  { %2379 = vmatpush3.bf16.msra.mxu1 %v2652_v47 }
 0x1cd   :  { %2380 = vmatprep.subr.bf16.mxu1 %v2653_v48 }
 0x1d0   :  { %2381 = vmatpush3.bf16.msra.mxu1 %v2653_v48 }
 0x1d1   :  { %2382 = vmatprep.subr.bf16.mxu1 %v2654_v49  ;;  %v2430_v1 = vpop.f32.mrb[4].mxu0 }
 0x1d2   :  { %v1039_v2 = vpop.f32.mrb[5].mxu0  ;;  %v1048_v19 = vadd.f32 %v2430_v1, %v2060_v16  ;;  %v2686_v1 = vld [vmem:[#allocation10 + $0xa8] sm:$0xff]  }
 0x1d3   :  { %v2431_v3 = vpop.f32.mrb[6].mxu0  ;;  %v1040_v22 = vadd.f32 %v2060_v16, %v1039_v2  ;;  %v2687_v2 = vld [vmem:[#allocation10 + $0xb0] sm:$0xff]  }
 0x1d4   :  { %2383 = vmatpush3.bf16.msra.mxu1 %v2654_v49  ;;  %v1042_v6 = vpop.f32.mrb[7].mxu0  ;;  %v1051_v31 = vadd.f32 %v2431_v3, %v2060_v16  ;;  %v2688_v3 = vld [vmem:[#allocation10 + $0xb8] sm:$0xff]  }
 0x1d5   :  { %2384 = vmatprep.subr.bf16.mxu1 %v2655_v50  ;;  %v1043_v34 = vadd.f32 %v2060_v16, %v1042_v6  ;;  %v2690_v6 = vld [vmem:[#allocation10 + $0x8] sm:$0xff]   ;;  %v2699_v16 = vld [vmem:[#allocation13 + $0x10] sm:$0xff]  }
 0x1d8   :  { %2385 = vmatpush3.bf16.msra.mxu1 %v2655_v50 }
 0x1d9   :  { %2386 = vmatprep.subr.bf16.mxu1 %v2656_v51 }
 0x1dc   :  { %2387 = vmatpush3.bf16.msra.mxu1 %v2656_v51 }
 0x1dd   :  { %2392 = vmatprep.subr.bf16.mxu1 %v2658_v52 }
 0x1df   :  { %2389 = vmatmul.mubr.bf16.vlgmr.msra.gmra.mrb[0].mxu1 %v545_v26 }
 0x1e0   :  { %2393 = vmatpush3.bf16.msra.mxu1 %v2658_v52  ;;  %2408 = vmatprep.mubr.msk.bf16.mxu1 %vm3154_vm6, %v2054_v44 }
 0x1e1   :  { %2394 = vmatprep.subr.bf16.mxu1 %v2660_v53 }
 0x1e4   :  { %2395 = vmatpush3.bf16.msra.mxu1 %v2660_v53 }
 0x1e5   :  { %2396 = vmatprep.subr.bf16.mxu1 %v2662_v54 }
 0x1e8   :  { %2397 = vmatpush3.bf16.msra.mxu1 %v2662_v54 }
 0x1e9   :  { %2398 = vmatprep.subr.bf16.mxu1 %v2664_v55 }
 0x1ec   :  { %2399 = vmatpush3.bf16.msra.mxu1 %v2664_v55 }
 0x1ed   :  { %2400 = vmatprep.subr.bf16.mxu1 %v2666_v56 }
 0x1f0   :  { %2401 = vmatpush3.bf16.msra.mxu1 %v2666_v56 }
 0x1f1   :  { %2402 = vmatprep.subr.bf16.mxu1 %v2668_v57 }
 0x1f4   :  { %2403 = vmatpush3.bf16.msra.mxu1 %v2668_v57 }
 0x1f5   :  { %2404 = vmatprep.subr.bf16.mxu1 %v2670_v58 }
 0x1f8   :  { %2405 = vmatpush3.bf16.msra.mxu1 %v2670_v58 }
 0x1f9   :  { %2406 = vmatprep.subr.bf16.mxu1 %v2672_v59 }
 0x1fc   :  { %2407 = vmatpush3.bf16.msra.mxu1 %v2672_v59 }
 0x1fd   :  { %2432 = vmatprep.subr.bf16.mxu1 %v2673_v60 }
 0x1ff   :  { %2409 = vmatmul.mubr.msk.bf16.vlgmr.msra.gmra.mrb[0].mxu1 %vm3154_vm6, %v2057_v40 }
 0x200   :  { %2433 = vmatpush3.bf16.msra.mxu1 %v2673_v60 }
 0x201   :  { %2434 = vmatprep.subr.bf16.mxu1 %v2674_v61 }
 0x204   :  { %2435 = vmatpush3.bf16.msra.mxu1 %v2674_v61  ;;  %v2682_v61 = vld [vmem:[#allocation10 + $0x88] sm:$0xff]  }
 0x205   :  { %2436 = vmatprep.subr.bf16.mxu1 %v2675_v62 }
 0x208   :  { %2437 = vmatpush3.bf16.msra.mxu1 %v2675_v62  ;;  %v2683_v62 = vld [vmem:[#allocation10 + $0x90] sm:$0xff]  }
 0x209   :  { %2438 = vmatprep.subr.bf16.mxu1 %v2676_v63 }
 0x20c   :  { %2439 = vmatpush3.bf16.msra.mxu1 %v2676_v63  ;;  %v2684_v63 = vld [vmem:[#allocation10 + $0x98] sm:$0xff]  }
 0x20d   :  { %2440 = vmatprep.subr.bf16.mxu1 %v2677_v0 }
 0x210   :  { %2441 = vmatpush3.bf16.msra.mxu1 %v2677_v0  ;;  %v2685_v0 = vld [vmem:[#allocation10 + $0xa0] sm:$0xff]  }
 0x211   :  { %2442 = vmatprep.subr.bf16.mxu1 %v2678_v5 }
 0x214   :  { %2443 = vmatpush3.bf16.msra.mxu1 %v2678_v5  ;;  %v2689_v5 = vld [vmem:[#allocation10] sm:$0xff]  }
 0x215   :  { %2444 = vmatprep.subr.bf16.mxu1 %v2679_v7 }
 0x218   :  { %2445 = vmatpush3.bf16.msra.mxu1 %v2679_v7  ;;  %v2691_v7 = vld [vmem:[#allocation10 + $0x10] sm:$0xff]  }
 0x219   :  { %2446 = vmatprep.subr.bf16.mxu1 %v2680_v8 }
 0x21c   :  { %2447 = vmatpush3.bf16.msra.mxu1 %v2680_v8  ;;  %v2692_v8 = vld [vmem:[#allocation10 + $0x18] sm:$0xff]  }
 0x21d   :  { %2452 = vmatprep.subr.bf16.mxu1 %v3223_v9 }
 0x2d2   :  { %v2410_v18 = vpop.f32.mrb[0].mxu1 }
 0x2d3   :  { %v928_v20 = vadd.f32 %v2410_v18, %v2059_v17  ;;  %v900_v21 = vpop.f32.mrb[1].mxu1  ;;  %v2701_v18 = vld [vmem:[#allocation13 + $0x20] sm:$0xff]  }
 0x2d4   :  { %v926_v23 = vadd.f32 %v2059_v17, %v900_v21  ;;  %v2411_v24 = vpop.f32.mrb[2].mxu1  ;;  %v2704_v21 = vld [vmem:[#allocation13 + $0x38] sm:$0xff]  }
 0x2d5   :  { %v932_v25 = vmax.f32 %v928_v20, 0.0  ;;  %v929_v26 = vadd.f32 %v2411_v24, %v2059_v17  ;;  %v903_v27 = vpop.f32.mrb[3].mxu1  ;;  %v2703_v20 = vld [vmem:[#allocation13 + $0x30] sm:$0xff]   ;;  %v2712_v24 = vld [vmem:[#allocation11 + $0x78] sm:$0xff]  }
 0x2d6   :  { %v930_v28 = vmax.f32 %v926_v23, 0.0  ;;  %v927_v29 = vadd.f32 %v2059_v17, %v903_v27  ;;  %v2700_v17 = vld [vmem:[#allocation13 + $0x18] sm:$0xff]   ;;  %v2711_v23 = vld [vmem:[#allocation11 + $0x70] sm:$0xff]  }
 0x2d7   :  { %v1056_v30 = vadd.f32 %v1048_v19, %v932_v25  ;;  %v933_v32 = vmax.f32 %v929_v26, 0.0  ;;  %v2702_v19 = vld [vmem:[#allocation13 + $0x28] sm:$0xff]   ;;  %v2713_v25 = vld [vmem:[#allocation11 + $0x80] sm:$0xff]  }
 0x2d8   :  { %v1054_v33 = vadd.f32 %v1040_v22, %v930_v28  ;;  %v931_v35 = vmax.f32 %v927_v29, 0.0  ;;  %v2710_v22 = vld [vmem:[#allocation11 + $0x68] sm:$0xff]   ;;  %v2105_v26 = vld [vmem:[%s3330_s8] ss:$0 sm:$0xff] }
 0x2d9   :  { %v1057_v36 = vadd.f32 %v1051_v31, %v933_v32  ;;  %v1079_v37 = vrot.slane %v1056_v30, 7  ;;  %v1304_v41 = vrot.slane %v1056_v30, 6  ;;  %2502 = vmatprep.subr.bf16.mxu0 %v2710_v22 }
 0x2da   :  { %v1077_v38 = vrot.slane %v1054_v33, 7  ;;  %v1302_v39 = vrot.slane %v1054_v33, 6  ;;  %v1055_v40 = vadd.f32 %v1043_v34, %v931_v35  ;;  %2503 = vmatpush3.bf16.msra.mxu0 %v2710_v22 }
 0x2db   :  { %v1080_v43 = vrot.slane %v1057_v36, 7  ;;  %v1305_v44 = vrot.slane %v1057_v36, 6  ;;  %v3232_v45 = vpack.c.bf16 %v1057_v36, %v1056_v30  ;;  %2504 = vmatprep.subr.bf16.mxu0 %v2711_v23 }
 0x2dc   :  { %v1078_v46 = vrot.slane %v1055_v40, 7  ;;  %v1303_v47 = vrot.slane %v1055_v40, 6  ;;  %v3234_v48 = vpack.c.bf16 %v1055_v40, %v1054_v33 }
 0x2dd   :  { %v1081_v49 = vsel %vm175_vm1, %v1079_v37, %v1080_v43  ;;  %v3240_v50 = vsel %vm401_vm5, %v1304_v41, %v1305_v44  ;;  %v1084_v51 = vsel %vm175_vm1, %v1080_v43, %v1077_v38  ;;  %v1309_v52 = vsel %vm401_vm5, %v1305_v44, %v1302_v39 }
 0x2de   :  { %v1082_v53 = vsel %vm175_vm1, %v1078_v46, %v1079_v37  ;;  %v1307_v54 = vsel %vm401_vm5, %v1303_v47, %v1304_v41  ;;  %v1083_v55 = vsel %vm175_vm1, %v1077_v38, %v1078_v46  ;;  %v1308_v56 = vsel %vm401_vm5, %v1302_v39, %v1303_v47  ;;  %2505 = vmatpush3.bf16.msra.mxu0 %v2711_v23 }
 0x2df   :  { %v2078_v57 = vpack.c.bf16 %v1083_v55, %v1084_v51  ;;  %v2081_v58 = vpack.c.bf16 %v1081_v49, %v1082_v53  ;;  %v2100_v59 = vpack.c.bf16 %v1308_v56, %v1309_v52  ;;  %v2103_v60 = vpack.c.bf16 %v3240_v50, %v1307_v54  ;;  %2506 = vmatprep.subr.bf16.mxu0 %v2712_v24 }
 0x2e1   :  { %2448 = vmatprep.mubr.msk.bf16.mxu1 %vm3128_vm3, %v2078_v57 }
 0x2e2   :  { %2449 = vmatmul.mubr.msk.bf16.vlgmr.msra.gmra.mrb[4].mxu1 %vm3128_vm3, %v2081_v58  ;;  %2507 = vmatpush3.bf16.msra.mxu0 %v2712_v24 }
 0x2e3   :  { %2453 = vmatpush3.bf16.msra.mxu1 %v3223_v9  ;;  %2468 = vmatprep.mubr.bf16.mxu1 %v3234_v48  ;;  %v2693_v9 = vld [vmem:[#allocation10 + $0x20] sm:$0xff]  }
 0x2e4   :  { %2454 = vmatprep.subr.bf16.mxu1 %v2682_v61  ;;  %2512 = vmatprep.subr.bf16.mxu0 %v2713_v25 }
 0x2e7   :  { %2455 = vmatpush3.bf16.msra.mxu1 %v2682_v61 }
 0x2e8   :  { %2456 = vmatprep.subr.bf16.mxu1 %v2683_v62 }
 0x2eb   :  { %2457 = vmatpush3.bf16.msra.mxu1 %v2683_v62  ;;  %v2714_v62 = vld [vmem:[#allocation11 + $0x88] sm:$0xff]  }
 0x2ec   :  { %2458 = vmatprep.subr.bf16.mxu1 %v2684_v63 }
 0x2ef   :  { %2459 = vmatpush3.bf16.msra.mxu1 %v2684_v63  ;;  %v2715_v63 = vld [vmem:[#allocation11 + $0x90] sm:$0xff]  }
 0x2f0   :  { %2460 = vmatprep.subr.bf16.mxu1 %v2685_v0 }
 0x2f3   :  { %2461 = vmatpush3.bf16.msra.mxu1 %v2685_v0  ;;  %v2717_v0 = vld [vmem:[#allocation11 + $0xa0] sm:$0xff]  }
 0x2f4   :  { %2462 = vmatprep.subr.bf16.mxu1 %v2686_v1 }
 0x2f7   :  { %2463 = vmatpush3.bf16.msra.mxu1 %v2686_v1  ;;  %v2718_v1 = vld [vmem:[#allocation11 + $0xa8] sm:$0xff]  }
 0x2f8   :  { %2464 = vmatprep.subr.bf16.mxu1 %v2687_v2 }
 0x2fb   :  { %2465 = vmatpush3.bf16.msra.mxu1 %v2687_v2 }
 0x2fc   :  { %2466 = vmatprep.subr.bf16.mxu1 %v2688_v3 }
 0x2ff   :  { %2467 = vmatpush3.bf16.msra.mxu1 %v2688_v3  ;;  %v2719_v3 = vld [vmem:[#allocation11 + $0xb0] sm:$0xff]  }
 0x300   :  { %2472 = vmatprep.subr.bf16.mxu1 %v2689_v5 }
 0x302   :  { %2469 = vmatmul.mubr.bf16.vlgmr.msra.gmra.mrb[4].mxu1 %v3232_v45 }
 0x303   :  { %2473 = vmatpush3.bf16.msra.mxu1 %v2689_v5  ;;  %2488 = vmatprep.mubr.msk.bf16.mxu1 %vm3154_vm6, %v2100_v59 }
 0x304   :  { %2474 = vmatprep.subr.bf16.mxu1 %v2690_v6 }
 0x307   :  { %2475 = vmatpush3.bf16.msra.mxu1 %v2690_v6 }
 0x308   :  { %2476 = vmatprep.subr.bf16.mxu1 %v2691_v7 }
 0x30b   :  { %2477 = vmatpush3.bf16.msra.mxu1 %v2691_v7  ;;  %v2720_v7 = vld [vmem:[#allocation11 + $0xb8] sm:$0xff]  }
 0x30c   :  { %2478 = vmatprep.subr.bf16.mxu1 %v2692_v8 }
 0x30f   :  { %2479 = vmatpush3.bf16.msra.mxu1 %v2692_v8  ;;  %v2721_v8 = vld [vmem:[#allocation11] sm:$0xff]  }
 0x310   :  { %2480 = vmatprep.subr.bf16.mxu1 %v2693_v9 }
 0x313   :  { %2481 = vmatpush3.bf16.msra.mxu1 %v2693_v9  ;;  %v2722_v9 = vld [vmem:[#allocation11 + $0x8] sm:$0xff]  }
 0x314   :  { %2482 = vmatprep.subr.bf16.mxu1 %v2694_v10 }
 0x317   :  { %2483 = vmatpush3.bf16.msra.mxu1 %v2694_v10  ;;  %v2723_v10 = vld [vmem:[#allocation11 + $0x10] sm:$0xff]  }
 0x318   :  { %2484 = vmatprep.subr.bf16.mxu1 %v2695_v11 }
 0x31b   :  { %2485 = vmatpush3.bf16.msra.mxu1 %v2695_v11  ;;  %v2724_v11 = vld [vmem:[#allocation11 + $0x18] sm:$0xff]  }
 0x31c   :  { %2486 = vmatprep.subr.bf16.mxu1 %v2696_v12 }
 0x31f   :  { %2487 = vmatpush3.bf16.msra.mxu1 %v2696_v12  ;;  %v2725_v12 = vld [vmem:[#allocation11 + $0x20] sm:$0xff]  }
 0x320   :  { %2552 = vmatprep.subr.bf16.mxu1 %v2697_v13 }
 0x322   :  { %2489 = vmatmul.mubr.msk.bf16.vlgmr.msra.gmra.mrb[4].mxu1 %vm3154_vm6, %v2103_v60 }
 0x323   :  { %2553 = vmatpush3.bf16.msra.mxu1 %v2697_v13  ;;  %2568 = vmatprep.mubr.bf16.mxu1 %v3234_v48  ;;  %v2726_v13 = vld [vmem:[#allocation11 + $0x28] sm:$0xff]  }
 0x324   :  { %2554 = vmatprep.subr.bf16.mxu1 %v2698_v15 }
 0x327   :  { %2555 = vmatpush3.bf16.msra.mxu1 %v2698_v15  ;;  %v2727_v15 = vld [vmem:[#allocation11 + $0x30] sm:$0xff]  }
 0x328   :  { %2556 = vmatprep.subr.bf16.mxu1 %v2699_v16 }
 0x32b   :  { %2557 = vmatpush3.bf16.msra.mxu1 %v2699_v16  ;;  %v2728_v16 = vld [vmem:[#allocation11 + $0x38] sm:$0xff]  }
 0x32c   :  { %2558 = vmatprep.subr.bf16.mxu1 %v2700_v17 }
 0x32f   :  { %2559 = vmatpush3.bf16.msra.mxu1 %v2700_v17  ;;  %v2142_v17 = vld [vmem:[%s3332_s10] ss:$0 sm:$0xff]  ;;  %s2927_s10 = smov [#allocation14]  }
 0x330   :  { %2560 = vmatprep.subr.bf16.mxu1 %v2701_v18  ;;  %s1971_s3 = sshll.u32 %s2927_s10, 4  ;;  %s1972_s3 = int_to_ptr.vmem [resolvable:$true] %s1971_s3 }
 0x331   :  { %p2888_p1 = scmp.lt.s32.totalorder %s1972_s3, %s1972_s3 }
 0x333   :  { %2561 = vmatpush3.bf16.msra.mxu1 %v2701_v18  ;;  %v2143_v18 = vld [vmem:[%s3334_s12] ss:$0 sm:$0xff]  ;;  %s2883_s12 = scalar_lea.vmem %s1972_s3, 512 }
 0x334   :  { %2562 = vmatprep.subr.bf16.mxu1 %v2702_v19  ;;  %p2884_p0 = scmp.ne.s32.totalorder %s1972_s3, %s2883_s12  ;;  %p2889_p2 = scmp.lt.s32.totalorder %s2883_s12, %s2883_s12 }
 0x336   :  { %p2890_p3 = por %p2889_p2, %p2888_p1 }
 0x337   :  { %2563 = vmatpush3.bf16.msra.mxu1 %v2702_v19 }
 0x338   :  { %2564 = vmatprep.subr.bf16.mxu1 %v2703_v20  ;;  %p2891_p4 = pnand %p2890_p3, %p2884_p0 }
 0x33b   :  { %2565 = vmatpush3.bf16.msra.mxu1 %v2703_v20 }
 0x33c   :  { %2566 = vmatprep.subr.bf16.mxu1 %v2704_v21 }
 0x33f   :  { %2567 = vmatpush3.bf16.msra.mxu1 %v2704_v21 }
 0x342   :  { %2569 = vmatmul.mubr.bf16.vlgmr.msra.gmra.mrb[8].mxu1 %v3232_v45 }
 0x3f5   :  { %v2490_v27 = vpop.f32.mrb[4].mxu1 }
 0x3f6   :  { %v1442_v28 = vadd.f32 %v2490_v27, %v2105_v26  ;;  %v1414_v29 = vpop.f32.mrb[5].mxu1 }
 0x3f7   :  { %v1440_v30 = vadd.f32 %v2105_v26, %v1414_v29  ;;  %v2491_v31 = vpop.f32.mrb[6].mxu1 }
 0x3f8   :  { %v1446_v32 = vmax.f32 %v1442_v28, 0.0  ;;  %v1443_v33 = vadd.f32 %v2491_v31, %v2105_v26  ;;  %v1417_v34 = vpop.f32.mrb[7].mxu1 }
 0x3f9   :  { %v1444_v35 = vmax.f32 %v1440_v30, 0.0  ;;  %v1441_v36 = vadd.f32 %v2105_v26, %v1417_v34 }
 0x3fa   :  { %v1447_v37 = vmax.f32 %v1443_v33, 0.0  ;;  %v1469_v38 = vrot.slane %v1446_v32, 7  ;;  %v1694_v43 = vrot.slane %v1446_v32, 6 }
 0x3fb   :  { %v1467_v39 = vrot.slane %v1444_v35, 7  ;;  %v1692_v40 = vrot.slane %v1444_v35, 6  ;;  %v1445_v41 = vmax.f32 %v1441_v36, 0.0 }
 0x3fc   :  { %v1449_v44 = vpack.c.bf16 %v1447_v37, %v1446_v32  ;;  %v1470_v45 = vrot.slane %v1447_v37, 7  ;;  %v1695_v46 = vrot.slane %v1447_v37, 6 }
 0x3fd   :  { %v1468_v47 = vrot.slane %v1445_v41, 7  ;;  %v1693_v48 = vrot.slane %v1445_v41, 6  ;;  %v1448_v49 = vpack.c.bf16 %v1445_v41, %v1444_v35 }
 0x3fe   :  { %v1471_v50 = vsel %vm175_vm1, %v1469_v38, %v1470_v45  ;;  %v3275_v51 = vsel %vm401_vm5, %v1694_v43, %v1695_v46  ;;  %v1474_v52 = vsel %vm175_vm1, %v1470_v45, %v1467_v39  ;;  %v1699_v53 = vsel %vm401_vm5, %v1695_v46, %v1692_v40 }
 0x3ff   :  { %v1472_v54 = vsel %vm175_vm1, %v1468_v47, %v1469_v38  ;;  %v3285_v55 = vsel %vm401_vm5, %v1693_v48, %v1694_v43  ;;  %v1473_v56 = vsel %vm175_vm1, %v1467_v39, %v1468_v47  ;;  %v1698_v57 = vsel %vm401_vm5, %v1692_v40, %v1693_v48 }
 0x400   :  { %v2118_v58 = vpack.c.bf16 %v1471_v50, %v1472_v54  ;;  %v2140_v59 = vpack.c.bf16 %v3275_v51, %v3285_v55  ;;  %v2115_v60 = vpack.c.bf16 %v1473_v56, %v1474_v52  ;;  %v2137_v61 = vpack.c.bf16 %v1698_v57, %v1699_v53 }
 0x402   :  { %2508 = vmatprep.mubr.msk.bf16.mxu0 %vm3128_vm3, %v2115_v60 }
 0x403   :  { %2509 = vmatmul.mubr.msk.bf16.vlgmr.msra.gmra.mrb[8].mxu0 %vm3128_vm3, %v2118_v58 }
 0x404   :  { %2513 = vmatpush3.bf16.msra.mxu0 %v2713_v25  ;;  %2528 = vmatprep.mubr.bf16.mxu0 %v1448_v49 }
 0x405   :  { %2514 = vmatprep.subr.bf16.mxu0 %v2714_v62 }
 0x408   :  { %2515 = vmatpush3.bf16.msra.mxu0 %v2714_v62 }
 0x409   :  { %2516 = vmatprep.subr.bf16.mxu0 %v2715_v63 }
 0x40c   :  { %2517 = vmatpush3.bf16.msra.mxu0 %v2715_v63 }
 0x40d   :  { %2518 = vmatprep.subr.bf16.mxu0 %v2716_v4 }
 0x410   :  { %2519 = vmatpush3.bf16.msra.mxu0 %v2716_v4 }
 0x411   :  { %2520 = vmatprep.subr.bf16.mxu0 %v2717_v0 }
 0x414   :  { %2521 = vmatpush3.bf16.msra.mxu0 %v2717_v0 }
 0x415   :  { %v2570_v2 = vpop.f32.mrb[8].mxu1  ;;  %2522 = vmatprep.subr.bf16.mxu0 %v2718_v1 }
 0x416   :  { %v1943_v5 = vpop.f32.mrb[9].mxu1  ;;  %v1952_v24 = vadd.f32 %v2570_v2, %v2143_v18 }
 0x417   :  { %v2571_v14 = vpop.f32.mrb[10].mxu1  ;;  %v1944_v28 = vadd.f32 %v2143_v18, %v1943_v5 }
 0x418   :  { %2523 = vmatpush3.bf16.msra.mxu0 %v2718_v1  ;;  %v1946_v6 = vpop.f32.mrb[11].mxu1  ;;  %v1955_v30 = vadd.f32 %v2571_v14, %v2143_v18 }
 0x419   :  { %2524 = vmatprep.subr.bf16.mxu0 %v2719_v3  ;;  %v1947_v33 = vadd.f32 %v2143_v18, %v1946_v6 }
 0x41c   :  { %2525 = vmatpush3.bf16.msra.mxu0 %v2719_v3 }
 0x41d   :  { %2526 = vmatprep.subr.bf16.mxu0 %v2720_v7 }
 0x420   :  { %2527 = vmatpush3.bf16.msra.mxu0 %v2720_v7 }
 0x421   :  { %2532 = vmatprep.subr.bf16.mxu0 %v2721_v8 }
 0x423   :  { %2529 = vmatmul.mubr.bf16.vlgmr.msra.gmra.mrb[8].mxu0 %v1449_v44 }
 0x424   :  { %2533 = vmatpush3.bf16.msra.mxu0 %v2721_v8  ;;  %2548 = vmatprep.mubr.msk.bf16.mxu0 %vm3154_vm6, %v2137_v61 }
 0x425   :  { %2534 = vmatprep.subr.bf16.mxu0 %v2722_v9 }
 0x428   :  { %2535 = vmatpush3.bf16.msra.mxu0 %v2722_v9 }
 0x429   :  { %2536 = vmatprep.subr.bf16.mxu0 %v2723_v10 }
 0x42c   :  { %2537 = vmatpush3.bf16.msra.mxu0 %v2723_v10 }
 0x42d   :  { %2538 = vmatprep.subr.bf16.mxu0 %v2724_v11 }
 0x430   :  { %2539 = vmatpush3.bf16.msra.mxu0 %v2724_v11 }
 0x431   :  { %2540 = vmatprep.subr.bf16.mxu0 %v2725_v12 }
 0x434   :  { %2541 = vmatpush3.bf16.msra.mxu0 %v2725_v12 }
 0x435   :  { %2542 = vmatprep.subr.bf16.mxu0 %v2726_v13 }
 0x438   :  { %2543 = vmatpush3.bf16.msra.mxu0 %v2726_v13 }
 0x439   :  { %2544 = vmatprep.subr.bf16.mxu0 %v2727_v15 }
 0x43c   :  { %2545 = vmatpush3.bf16.msra.mxu0 %v2727_v15 }
 0x43d   :  { %2546 = vmatprep.subr.bf16.mxu0 %v2728_v16 }
 0x440   :  { %2547 = vmatpush3.bf16.msra.mxu0 %v2728_v16 }
 0x443   :  { %2549 = vmatmul.mubr.msk.bf16.vlgmr.msra.gmra.mrb[8].mxu0 %vm3154_vm6, %v2140_v59 }
 0x516   :  { %v2550_v19 = vpop.f32.mrb[8].mxu0 }
 0x517   :  { %v1832_v20 = vadd.f32 %v2550_v19, %v2142_v17  ;;  %v1804_v21 = vpop.f32.mrb[9].mxu0 }
 0x518   :  { %v1830_v22 = vadd.f32 %v2142_v17, %v1804_v21  ;;  %v2551_v23 = vpop.f32.mrb[10].mxu0 }
 0x519   :  { %v1836_v25 = vmax.f32 %v1832_v20, 0.0  ;;  %v1833_v26 = vadd.f32 %v2551_v23, %v2142_v17  ;;  %v1807_v27 = vpop.f32.mrb[11].mxu0 }
 0x51a   :  { %v1834_v42 = vmax.f32 %v1830_v22, 0.0  ;;  %v1831_v29 = vadd.f32 %v2142_v17, %v1807_v27 }
 0x51b   :  { %v1960_v31 = vadd.f32 %v1952_v24, %v1836_v25  ;;  %v1837_v32 = vmax.f32 %v1833_v26, 0.0 }
 0x51c   :  { %v1958_v34 = vadd.f32 %v1944_v28, %v1834_v42  ;;  %v1835_v35 = vmax.f32 %v1831_v29, 0.0 }
 0x51d   :  { %1964 = vst [vmem:[#allocation14 + $0x10] sm:$0xff] %v1960_v31  ;;  %v1961_v36 = vadd.f32 %v1955_v30, %v1837_v32 }
 0x51e   :  { %1962 = vst [vmem:[#allocation14] sm:$0xff] %v1958_v34  ;;  %v1959_v37 = vadd.f32 %v1947_v33, %v1835_v35 }
 0x51f   :  { %1965 = vst [vmem:[#allocation14 + $0x18] sm:$0xff] %v1961_v36 }
 0x520   :  { %1963 = vst [vmem:[#allocation14 + $0x8] sm:$0xff] %v1959_v37 }
 0x521   :  { %2894 = shalt.err (!%p2891_p4)
}
 0x522   :  { %s2895_s17 = scalar_lea.hbm %s3335_s13, 512 }
 0x523   :  { %p2896_p5 = scmp.ne.s32.totalorder %s3335_s13, %s2895_s17  ;;  %p2899_p6 = scmp.lt.u32.totalorder %s2895_s17, %s3335_s13 }
 0x525   :  { %p2901_p7 = pnand %p2899_p6, %p2896_p5 }
 0x527   :  { %2904 = shalt.err (!%p2901_p7)
}
 0x528   :  { %1977 = dma.vmem_to_hbm [thread:$0]  %s1972_s3, 512, %s3335_s13, [#allocation4], %s2921_s9, %s2921_s9, %s2922_s25  }
 0x529   :  { %2913 = dma.done.wait [#allocation4], 512  }
 0x52a   :  { %2914 = vsyncadd [#allocation4], 4294966784 }
 0x52b   :  { %1981 = vsyncpa [#allocation3], 1 }
 0x52c   :  { %1982 = vsyncpa [#allocation6], 1 }
 0x52d   :  { %1983 = vsyncpa [#allocation9], 1 }
 0x52e   :  { %1984 = vsyncpa [#allocation12], 1 }
 0x52f   :  { %1985 = vsyncpa [#allocation4], 1 }

</bundles_post_ra>
